<compile_context>
chip_gen: v7x
topology: tpu7x:2x2x1
jax: 0.10.0
libtpu: 0.0.40
codegen_flags: <defaults>
</compile_context>

<pallas_src>
import functools

import numpy as np
import jax
import jax.numpy as jnp
from jax import lax
from jax.experimental import pallas as pl
from jax.experimental.pallas import tpu as pltpu


def _bilinear_up_matrix(s: int) -> np.ndarray:
    """(2s, s) matrix M so that M @ v == 2x bilinear upsample of v along one
    axis, matching PyTorch nn.Upsample(scale_factor=2, mode='bilinear',
    align_corners=False)."""
    out = 2 * s
    src = (np.arange(out, dtype=np.float64) + 0.5) / 2.0 - 0.5
    src = np.maximum(src, 0.0)                       # PyTorch clamps negatives
    i0 = np.clip(np.floor(src).astype(np.int64), 0, s - 1)
    i1 = np.minimum(i0 + 1, s - 1)
    lam = src - i0
    m = np.zeros((out, s), dtype=np.float64)
    m[np.arange(out), i0] += 1.0 - lam
    m[np.arange(out), i1] += lam
    return m.astype(np.float32)


# ------------------------------ fused kernel --------------------------------

def _deconv_kernel(x_ref, ku_ref, w_ref, b_ref, m_ref, o_ref, *, w2):
    # x_ref : (Cin_p, H*W)      one image, channel-major, flat spatial
    # ku_ref: (H*W, S)          kron(UH^T, UW^T) 2x bilinear upsample matrix
    # w_ref : (9, Cout, Cin_p)  conv taps, tap = kh*3 + kw
    # b_ref : (Cout, 1)         bias (broadcasts along lanes)
    # m_ref : (9, S)            0/1 border-validity mask per tap
    # o_ref : (Cout, S)         NCHW-flat output, S = H2*W2 on lanes
    s = ku_ref.shape[1]
    cout = w_ref.shape[1]

    # --- 2x bilinear upsample: single lane-dense MXU matmul -> (Cin_p, S) ---
    up = jnp.dot(x_ref[...], ku_ref[...], preferred_element_type=jnp.float32)

    # --- 3x3 conv (padding=1): 9 output-major matmuls on lane-rolled slabs ---
    acc = jnp.zeros((cout, s), jnp.float32)
    for tap in range(9):
        dh, dw = tap // 3 - 1, tap % 3 - 1
        if dh == 0 and dw == 0:
            shifted = up                                  # center tap: no shift
        else:
            # want shifted[p] = up[p + dh*W2 + dw] (zero where out of bounds)
            shift = (-(dh * w2 + dw)) % s
            shifted = pltpu.roll(up, shift, axis=1) * m_ref[tap:tap + 1, :]
        acc = acc + jnp.dot(w_ref[tap], shifted,
                            preferred_element_type=jnp.float32)

    o_ref[...] = (acc + b_ref[...]).astype(o_ref.dtype)


# --------------------------------- wrapper -----------------------------------

def deconv2d_forward(x, w, b):
    """x: (N, Cin, H, W) f32; w: (Cout, Cin, 3, 3) f32 (torch OIHW); b: (Cout,)"""
    n, cin, h, w_in = x.shape
    cout = w.shape[0]
    h2, w2 = 2 * h, 2 * w_in
    hw, s = h * w_in, h2 * w2
    cin_p = -(-cin // 8) * 8        # pad channels so every tile is (8,128)-aligned

    # Host-side constants (tiny): kron'd bilinear matrix + per-tap border masks.
    uh = _bilinear_up_matrix(h)                              # (H2, H)
    uw = _bilinear_up_matrix(w_in)                           # (W2, W)
    ku = jnp.asarray(np.kron(uh.T, uw.T))                    # (H*W, S)

    masks_np = np.zeros((9, s), np.float32)
    oh = np.arange(h2)[:, None]
    ow = np.arange(w2)[None, :]
    for tap in range(9):
        dh, dw = tap // 3 - 1, tap % 3 - 1
        valid = ((oh + dh >= 0) & (oh + dh < h2) &
                 (ow + dw >= 0) & (ow + dw < w2))
        masks_np[tap] = valid.astype(np.float32).reshape(-1)
    masks = jnp.asarray(masks_np)

    # Cheap parameter / input shuffles (all on the small pre-upsample tensors).
    x_flat = x.reshape(n, cin, hw)                            # free reshape
    if cin_p != cin:
        x_flat = jnp.pad(x_flat, ((0, 0), (0, cin_p - cin), (0, 0)))
    w9 = jnp.transpose(w, (2, 3, 0, 1)).reshape(9, cout, cin)  # tap-major
    if cin_p != cin:
        w9 = jnp.pad(w9, ((0, 0), (0, 0), (0, cin_p - cin)))
    b_r = b.reshape(cout, 1)

    kernel = functools.partial(_deconv_kernel, w2=w2)
    bytes_accessed = 4 * (n * cin_p * hw + hw * s + 9 * cout * cin_p
                          + cout + 9 * s + n * cout * s)
    cost = pl.CostEstimate(flops=int(2 * n * cin_p * s * (hw + 9 * cout)),
                           transcendentals=0,
                           bytes_accessed=int(bytes_accessed))

    out_flat = pl.pallas_call(
        kernel,
        out_shape=jax.ShapeDtypeStruct((n, cout, s), jnp.float32),
        grid=(n,),
        in_specs=[pl.BlockSpec((None, cin_p, hw), lambda i: (i, 0, 0)),
                  pl.BlockSpec((hw, s), lambda i: (0, 0)),
                  pl.BlockSpec((9, cout, cin_p), lambda i: (0, 0, 0)),
                  pl.BlockSpec((cout, 1), lambda i: (0, 0)),
                  pl.BlockSpec((9, s), lambda i: (0, 0))],
        out_specs=pl.BlockSpec((None, cout, s), lambda i: (i, 0, 0)),
        compiler_params=pltpu.CompilerParams(
            dimension_semantics=("parallel",)),
        cost_estimate=cost,
    )(x_flat, ku, w9, b_r, masks)

    return out_flat.reshape(n, cout, h2, w2)      # free reshape, already NCHW


if __name__ == "__main__":
    # Deconv2d(n_in=4, n_out=8) on x of shape (2, 4, 16, 16)
    n_in, n_out = 4, 8
    N, H, W = 2, 16, 16

    key = jax.random.PRNGKey(0)
    kx, kw, kb = jax.random.split(key, 3)
    x = jax.random.normal(kx, (N, n_in, H, W), jnp.float32)

    # Conv2d params: xavier_uniform_ weight; small random bias to exercise the
    # bias path (module zero-inits bias, forward semantics are identical).
    fan_in, fan_out = n_in * 3 * 3, n_out * 3 * 3
    bound = float(np.sqrt(6.0 / (fan_in + fan_out)))
    w = jax.random.uniform(kw, (n_out, n_in, 3, 3), jnp.float32, -bound, bound)
    b = 0.1 * jax.random.normal(kb, (n_out,), jnp.float32)

    out = jax.block_until_ready(jax.jit(deconv2d_forward)(x, w, b))
    assert out.shape == (N, n_out, 2 * H, 2 * W)

    # Pure-JAX reference (same bilinear matrices + XLA conv) for a sanity check.
    uh_r = jnp.asarray(_bilinear_up_matrix(H))
    uw_r = jnp.asarray(_bilinear_up_matrix(W))
    up_ref = jnp.einsum('ah,nchw->ncaw', uh_r, x)
    up_ref = jnp.einsum('bw,ncaw->ncab', uw_r, up_ref)
    conv_ref = lax.conv_general_dilated(
        up_ref, w, window_strides=(1, 1), padding='SAME',
        dimension_numbers=('NCHW', 'OIHW', 'NCHW')) + b[None, :, None, None]
    np.testing.assert_allclose(np.asarray(out), np.asarray(conv_ref),
                               rtol=1e-4, atol=1e-4)

    print("KERNEL_OK")
</pallas_src>

<mosaic_0001>
module attributes {stable_mosaic.version = 11 : i64} {
  func.func @_deconv_kernel(%arg0: i32, %arg1: memref<1x8x256xf32, #tpu.memory_space<vmem>>, %arg2: memref<256x1024xf32, #tpu.memory_space<vmem>>, %arg3: memref<9x8x8xf32, #tpu.memory_space<vmem>>, %arg4: memref<8x1xf32, #tpu.memory_space<vmem>>, %arg5: memref<9x1024xf32, #tpu.memory_space<vmem>>, %arg6: memref<1x8x1024xf32, #tpu.memory_space<vmem>>) attributes {dimension_semantics = [#tpu.dimension_semantics<parallel>], iteration_bounds = array<i64: 2>, scalar_prefetch = 0 : i64, scratch_operands = 0 : i64, tpu.core_type = #tpu.core_type<tc>, window_params = [{transform_indices = @transform_0, window_bounds = array<i64: 1, 8, 256>}, {pipeline_mode = #tpu.pipeline_mode<synchronous>, transform_indices = @transform_1, window_bounds = array<i64: 256, 1024>}, {pipeline_mode = #tpu.pipeline_mode<synchronous>, transform_indices = @transform_2, window_bounds = array<i64: 9, 8, 8>}, {pipeline_mode = #tpu.pipeline_mode<synchronous>, transform_indices = @transform_3, window_bounds = array<i64: 8, 1>}, {pipeline_mode = #tpu.pipeline_mode<synchronous>, transform_indices = @transform_4, window_bounds = array<i64: 9, 1024>}, {transform_indices = @transform_5, window_bounds = array<i64: 1, 8, 1024>}]} {
    %c0 = arith.constant 0 : index
    %c0_0 = arith.constant 0 : index
    %c0_1 = arith.constant 0 : index
    %0 = vector.load %arg1[%c0, %c0_0, %c0_1] : memref<1x8x256xf32, #tpu.memory_space<vmem>>, vector<1x8x256xf32>
    %1 = vector.shape_cast %0 : vector<1x8x256xf32> to vector<8x256xf32>
    %c0_2 = arith.constant 0 : index
    %c0_3 = arith.constant 0 : index
    %2 = vector.load %arg2[%c0_2, %c0_3] : memref<256x1024xf32, #tpu.memory_space<vmem>>, vector<256x1024xf32>
    %cst = arith.constant dense<0.000000e+00> : vector<8x1024xf32>
    %3 = tpu.matmul %1, %2, %cst {dimension_numbers = #tpu.dot_dimension_numbers<[1], [0], [0], [1], [0, 0, 1, 1], [], []>} : vector<8x256xf32>, vector<256x1024xf32>, vector<8x1024xf32> -> vector<8x1024xf32>
    %cst_4 = arith.constant 0.000000e+00 : f32
    %4 = vector.broadcast %cst_4 : f32 to vector<8x1024xf32>
    %c33_i32 = arith.constant 33 : i32
    %5 = tpu.dynamic_rotate %3 by %c33_i32 dim 1 : vector<8x1024xf32>, i32 -> vector<8x1024xf32>
    %c0_5 = arith.constant 0 : index
    %c0_6 = arith.constant 0 : index
    %6 = vector.load %arg5[%c0_5, %c0_6] : memref<9x1024xf32, #tpu.memory_space<vmem>>, vector<1x1024xf32>
    %7 = vector.broadcast %6 : vector<1x1024xf32> to vector<8x1024xf32>
    %8 = arith.mulf %5, %7 : vector<8x1024xf32>
    %c0_7 = arith.constant 0 : index
    %c0_8 = arith.constant 0 : index
    %c0_9 = arith.constant 0 : index
    %9 = vector.load %arg3[%c0_7, %c0_8, %c0_9] : memref<9x8x8xf32, #tpu.memory_space<vmem>>, vector<1x8x8xf32>
    %10 = vector.shape_cast %9 : vector<1x8x8xf32> to vector<8x8xf32>
    %cst_10 = arith.constant dense<0.000000e+00> : vector<8x1024xf32>
    %11 = tpu.matmul %10, %8, %cst_10 {dimension_numbers = #tpu.dot_dimension_numbers<[1], [0], [0], [1], [0, 0, 1, 1], [], []>} : vector<8x8xf32>, vector<8x1024xf32>, vector<8x1024xf32> -> vector<8x1024xf32>
    %12 = arith.addf %4, %11 : vector<8x1024xf32>
    %c32_i32 = arith.constant 32 : i32
    %13 = tpu.dynamic_rotate %3 by %c32_i32 dim 1 : vector<8x1024xf32>, i32 -> vector<8x1024xf32>
    %c1 = arith.constant 1 : index
    %c0_11 = arith.constant 0 : index
    %14 = vector.load %arg5[%c1, %c0_11] : memref<9x1024xf32, #tpu.memory_space<vmem>>, vector<1x1024xf32>
    %15 = vector.broadcast %14 : vector<1x1024xf32> to vector<8x1024xf32>
    %16 = arith.mulf %13, %15 : vector<8x1024xf32>
    %c1_12 = arith.constant 1 : index
    %c0_13 = arith.constant 0 : index
    %c0_14 = arith.constant 0 : index
    %17 = vector.load %arg3[%c1_12, %c0_13, %c0_14] : memref<9x8x8xf32, #tpu.memory_space<vmem>>, vector<1x8x8xf32>
    %18 = vector.shape_cast %17 : vector<1x8x8xf32> to vector<8x8xf32>
    %cst_15 = arith.constant dense<0.000000e+00> : vector<8x1024xf32>
    %19 = tpu.matmul %18, %16, %cst_15 {dimension_numbers = #tpu.dot_dimension_numbers<[1], [0], [0], [1], [0, 0, 1, 1], [], []>} : vector<8x8xf32>, vector<8x1024xf32>, vector<8x1024xf32> -> vector<8x1024xf32>
    %20 = arith.addf %12, %19 : vector<8x1024xf32>
    %c31_i32 = arith.constant 31 : i32
    %21 = tpu.dynamic_rotate %3 by %c31_i32 dim 1 : vector<8x1024xf32>, i32 -> vector<8x1024xf32>
    %c2 = arith.constant 2 : index
    %c0_16 = arith.constant 0 : index
    %22 = vector.load %arg5[%c2, %c0_16] : memref<9x1024xf32, #tpu.memory_space<vmem>>, vector<1x1024xf32>
    %23 = vector.broadcast %22 : vector<1x1024xf32> to vector<8x1024xf32>
    %24 = arith.mulf %21, %23 : vector<8x1024xf32>
    %c2_17 = arith.constant 2 : index
    %c0_18 = arith.constant 0 : index
    %c0_19 = arith.constant 0 : index
    %25 = vector.load %arg3[%c2_17, %c0_18, %c0_19] : memref<9x8x8xf32, #tpu.memory_space<vmem>>, vector<1x8x8xf32>
    %26 = vector.shape_cast %25 : vector<1x8x8xf32> to vector<8x8xf32>
    %cst_20 = arith.constant dense<0.000000e+00> : vector<8x1024xf32>
    %27 = tpu.matmul %26, %24, %cst_20 {dimension_numbers = #tpu.dot_dimension_numbers<[1], [0], [0], [1], [0, 0, 1, 1], [], []>} : vector<8x8xf32>, vector<8x1024xf32>, vector<8x1024xf32> -> vector<8x1024xf32>
    %28 = arith.addf %20, %27 : vector<8x1024xf32>
    %c1_i32 = arith.constant 1 : i32
    %29 = tpu.dynamic_rotate %3 by %c1_i32 dim 1 : vector<8x1024xf32>, i32 -> vector<8x1024xf32>
    %c3 = arith.constant 3 : index
    %c0_21 = arith.constant 0 : index
    %30 = vector.load %arg5[%c3, %c0_21] : memref<9x1024xf32, #tpu.memory_space<vmem>>, vector<1x1024xf32>
    %31 = vector.broadcast %30 : vector<1x1024xf32> to vector<8x1024xf32>
    %32 = arith.mulf %29, %31 : vector<8x1024xf32>
    %c3_22 = arith.constant 3 : index
    %c0_23 = arith.constant 0 : index
    %c0_24 = arith.constant 0 : index
    %33 = vector.load %arg3[%c3_22, %c0_23, %c0_24] : memref<9x8x8xf32, #tpu.memory_space<vmem>>, vector<1x8x8xf32>
    %34 = vector.shape_cast %33 : vector<1x8x8xf32> to vector<8x8xf32>
    %cst_25 = arith.constant dense<0.000000e+00> : vector<8x1024xf32>
    %35 = tpu.matmul %34, %32, %cst_25 {dimension_numbers = #tpu.dot_dimension_numbers<[1], [0], [0], [1], [0, 0, 1, 1], [], []>} : vector<8x8xf32>, vector<8x1024xf32>, vector<8x1024xf32> -> vector<8x1024xf32>
    %36 = arith.addf %28, %35 : vector<8x1024xf32>
    %c4 = arith.constant 4 : index
    %c0_26 = arith.constant 0 : index
    %c0_27 = arith.constant 0 : index
    %37 = vector.load %arg3[%c4, %c0_26, %c0_27] : memref<9x8x8xf32, #tpu.memory_space<vmem>>, vector<1x8x8xf32>
    %38 = vector.shape_cast %37 : vector<1x8x8xf32> to vector<8x8xf32>
    %cst_28 = arith.constant dense<0.000000e+00> : vector<8x1024xf32>
    %39 = tpu.matmul %38, %3, %cst_28 {dimension_numbers = #tpu.dot_dimension_numbers<[1], [0], [0], [1], [0, 0, 1, 1], [], []>} : vector<8x8xf32>, vector<8x1024xf32>, vector<8x1024xf32> -> vector<8x1024xf32>
    %40 = arith.addf %36, %39 : vector<8x1024xf32>
    %c1023_i32 = arith.constant 1023 : i32
    %41 = tpu.dynamic_rotate %3 by %c1023_i32 dim 1 : vector<8x1024xf32>, i32 -> vector<8x1024xf32>
    %c5 = arith.constant 5 : index
    %c0_29 = arith.constant 0 : index
    %42 = vector.load %arg5[%c5, %c0_29] : memref<9x1024xf32, #tpu.memory_space<vmem>>, vector<1x1024xf32>
    %43 = vector.broadcast %42 : vector<1x1024xf32> to vector<8x1024xf32>
    %44 = arith.mulf %41, %43 : vector<8x1024xf32>
    %c5_30 = arith.constant 5 : index
    %c0_31 = arith.constant 0 : index
    %c0_32 = arith.constant 0 : index
    %45 = vector.load %arg3[%c5_30, %c0_31, %c0_32] : memref<9x8x8xf32, #tpu.memory_space<vmem>>, vector<1x8x8xf32>
    %46 = vector.shape_cast %45 : vector<1x8x8xf32> to vector<8x8xf32>
    %cst_33 = arith.constant dense<0.000000e+00> : vector<8x1024xf32>
    %47 = tpu.matmul %46, %44, %cst_33 {dimension_numbers = #tpu.dot_dimension_numbers<[1], [0], [0], [1], [0, 0, 1, 1], [], []>} : vector<8x8xf32>, vector<8x1024xf32>, vector<8x1024xf32> -> vector<8x1024xf32>
    %48 = arith.addf %40, %47 : vector<8x1024xf32>
    %c993_i32 = arith.constant 993 : i32
    %49 = tpu.dynamic_rotate %3 by %c993_i32 dim 1 : vector<8x1024xf32>, i32 -> vector<8x1024xf32>
    %c6 = arith.constant 6 : index
    %c0_34 = arith.constant 0 : index
    %50 = vector.load %arg5[%c6, %c0_34] : memref<9x1024xf32, #tpu.memory_space<vmem>>, vector<1x1024xf32>
    %51 = vector.broadcast %50 : vector<1x1024xf32> to vector<8x1024xf32>
    %52 = arith.mulf %49, %51 : vector<8x1024xf32>
    %c6_35 = arith.constant 6 : index
    %c0_36 = arith.constant 0 : index
    %c0_37 = arith.constant 0 : index
    %53 = vector.load %arg3[%c6_35, %c0_36, %c0_37] : memref<9x8x8xf32, #tpu.memory_space<vmem>>, vector<1x8x8xf32>
    %54 = vector.shape_cast %53 : vector<1x8x8xf32> to vector<8x8xf32>
    %cst_38 = arith.constant dense<0.000000e+00> : vector<8x1024xf32>
    %55 = tpu.matmul %54, %52, %cst_38 {dimension_numbers = #tpu.dot_dimension_numbers<[1], [0], [0], [1], [0, 0, 1, 1], [], []>} : vector<8x8xf32>, vector<8x1024xf32>, vector<8x1024xf32> -> vector<8x1024xf32>
    %56 = arith.addf %48, %55 : vector<8x1024xf32>
    %c992_i32 = arith.constant 992 : i32
    %57 = tpu.dynamic_rotate %3 by %c992_i32 dim 1 : vector<8x1024xf32>, i32 -> vector<8x1024xf32>
    %c7 = arith.constant 7 : index
    %c0_39 = arith.constant 0 : index
    %58 = vector.load %arg5[%c7, %c0_39] : memref<9x1024xf32, #tpu.memory_space<vmem>>, vector<1x1024xf32>
    %59 = vector.broadcast %58 : vector<1x1024xf32> to vector<8x1024xf32>
    %60 = arith.mulf %57, %59 : vector<8x1024xf32>
    %c7_40 = arith.constant 7 : index
    %c0_41 = arith.constant 0 : index
    %c0_42 = arith.constant 0 : index
    %61 = vector.load %arg3[%c7_40, %c0_41, %c0_42] : memref<9x8x8xf32, #tpu.memory_space<vmem>>, vector<1x8x8xf32>
    %62 = vector.shape_cast %61 : vector<1x8x8xf32> to vector<8x8xf32>
    %cst_43 = arith.constant dense<0.000000e+00> : vector<8x1024xf32>
    %63 = tpu.matmul %62, %60, %cst_43 {dimension_numbers = #tpu.dot_dimension_numbers<[1], [0], [0], [1], [0, 0, 1, 1], [], []>} : vector<8x8xf32>, vector<8x1024xf32>, vector<8x1024xf32> -> vector<8x1024xf32>
    %64 = arith.addf %56, %63 : vector<8x1024xf32>
    %c991_i32 = arith.constant 991 : i32
    %65 = tpu.dynamic_rotate %3 by %c991_i32 dim 1 : vector<8x1024xf32>, i32 -> vector<8x1024xf32>
    %c8 = arith.constant 8 : index
    %c0_44 = arith.constant 0 : index
    %66 = vector.load %arg5[%c8, %c0_44] : memref<9x1024xf32, #tpu.memory_space<vmem>>, vector<1x1024xf32>
    %67 = vector.broadcast %66 : vector<1x1024xf32> to vector<8x1024xf32>
    %68 = arith.mulf %65, %67 : vector<8x1024xf32>
    %c8_45 = arith.constant 8 : index
    %c0_46 = arith.constant 0 : index
    %c0_47 = arith.constant 0 : index
    %69 = vector.load %arg3[%c8_45, %c0_46, %c0_47] : memref<9x8x8xf32, #tpu.memory_space<vmem>>, vector<1x8x8xf32>
    %70 = vector.shape_cast %69 : vector<1x8x8xf32> to vector<8x8xf32>
    %cst_48 = arith.constant dense<0.000000e+00> : vector<8x1024xf32>
    %71 = tpu.matmul %70, %68, %cst_48 {dimension_numbers = #tpu.dot_dimension_numbers<[1], [0], [0], [1], [0, 0, 1, 1], [], []>} : vector<8x8xf32>, vector<8x1024xf32>, vector<8x1024xf32> -> vector<8x1024xf32>
    %72 = arith.addf %64, %71 : vector<8x1024xf32>
    %c0_49 = arith.constant 0 : index
    %c0_50 = arith.constant 0 : index
    %73 = vector.load %arg4[%c0_49, %c0_50] : memref<8x1xf32, #tpu.memory_space<vmem>>, vector<8x1xf32>
    %74 = vector.broadcast %73 : vector<8x1xf32> to vector<8x1024xf32>
    %75 = arith.addf %72, %74 : vector<8x1024xf32>
    %c0_51 = arith.constant 0 : index
    %c0_52 = arith.constant 0 : index
    %c0_53 = arith.constant 0 : index
    %76 = vector.load %arg6[%c0_51, %c0_52, %c0_53] : memref<1x8x1024xf32, #tpu.memory_space<vmem>>, vector<1x8x1024xf32>
    %77 = vector.shape_cast %76 : vector<1x8x1024xf32> to vector<8x1024xf32>
    %78 = vector.shape_cast %75 : vector<8x1024xf32> to vector<1x8x1024xf32>
    tpu.vector_store %arg6[%c0_51, %c0_52, %c0_53], %78 {strides = array<i32>} : memref<1x8x1024xf32, #tpu.memory_space<vmem>>, vector<1x8x1024xf32>,
    return
  }
  func.func @transform_0(%arg0: i32) -> (i32, i32, i32) {
    %c0_i32 = arith.constant 0 : i32
    %c0_i32_0 = arith.constant 0 : i32
    %c0_i32_1 = arith.constant 0 : i32
    return %arg0, %c0_i32, %c0_i32_0 : i32, i32, i32
  }
  func.func @transform_1(%arg0: i32) -> (i32, i32) {
    %c0_i32 = arith.constant 0 : i32
    %c0_i32_0 = arith.constant 0 : i32
    %c0_i32_1 = arith.constant 0 : i32
    return %c0_i32, %c0_i32_0 : i32, i32
  }
  func.func @transform_2(%arg0: i32) -> (i32, i32, i32) {
    %c0_i32 = arith.constant 0 : i32
    %c0_i32_0 = arith.constant 0 : i32
    %c0_i32_1 = arith.constant 0 : i32
    %c0_i32_2 = arith.constant 0 : i32
    return %c0_i32, %c0_i32_0, %c0_i32_1 : i32, i32, i32
  }
  func.func @transform_3(%arg0: i32) -> (i32, i32) {
    %c0_i32 = arith.constant 0 : i32
    %c0_i32_0 = arith.constant 0 : i32
    %c0_i32_1 = arith.constant 0 : i32
    return %c0_i32, %c0_i32_0 : i32, i32
  }
  func.func @transform_4(%arg0: i32) -> (i32, i32) {
    %c0_i32 = arith.constant 0 : i32
    %c0_i32_0 = arith.constant 0 : i32
    %c0_i32_1 = arith.constant 0 : i32
    return %c0_i32, %c0_i32_0 : i32, i32
  }
  func.func @transform_5(%arg0: i32) -> (i32, i32, i32) {
    %c0_i32 = arith.constant 0 : i32
    %c0_i32_0 = arith.constant 0 : i32
    %c0_i32_1 = arith.constant 0 : i32
    return %arg0, %c0_i32, %c0_i32_0 : i32, i32, i32
  }
}

</mosaic_0001>

<bundles_post_ra>
// kernel: deconv2d_forward.1
= control target key start
LH: loop header
LB: loop body
LE: loop exit
PB: predicated region body
PF: predicated region fallthrough
CT: control target
= control target key end

     0   :  { %10 = vsyncpa [#allocation3], 0  ;;  %s4661_s18 = smov 0   ;;  %s5511_s0 = inlined_call_operand.vmem [shape: f32[2,8,256], index: 0, kind: input, shape index: {}]   ;;  %s5512_s1 = inlined_call_operand.hbm [shape: f32[256,1024], index: 1, kind: input, shape index: {}]   ;;  %s5513_s2 = inlined_call_operand.vmem [shape: f32[9,8,8], index: 2, kind: input, shape index: {}]   ;;  %s5514_s3 = inlined_call_operand.vmem [shape: f32[8,1], index: 3, kind: input, shape index: {}]   ;;  %s5515_s4 = inlined_call_operand.vmem [shape: f32[9,1024], index: 4, kind: input, shape index: {}]   ;;  %s5516_s5 = inlined_call_operand.vmem [shape: f32[2,8,1024], index: 5, kind: output, shape index: {}]  }
   0x1 LB: > { %s4667_s19 = sadd.s32 4294967295, %s4616_s18   ;;  %p4155_p0 = scmp.ge.s32.totalorder %s4616_s18, 1  ;;  %s4616_s18 = sphi %s4661_s18, %s16_s18  }
   0x2   : > { %p157_p1 = scmp.lt.s32.totalorder %s4616_s18, 3  ;;  %s4618_s20 = smov [#allocation2]  }
   0x3   : > { %s169_s21 = sshll.u32 %s4618_s20, 4  ;;  %p5517_p3 = scmp.eq.s32.totalorder %s4667_s19, 0  ;;  %s170_s21 = int_to_ptr.vmem [resolvable:$true] %s169_s21 }
   0x4   : > { %p4671_p2 = pnand %p4155_p0, %p157_p1  ;;  %s4578_s26 = scalar_lea.hbm %s5512_s1, 32768 }
   0x5   : > { %p4579_p6 = scmp.ne.s32.totalorder %s5512_s1, %s4578_s26  ;;  %p4585_p10 = scmp.lt.u32.totalorder %s4578_s26, %s5512_s1 }
   0x6   : > { %s5519_s22 = scalar_select %p4671_p2, 1, 0 }
   0x7   : > { %p4550_p4 = pneg %p4671_p2 }
   0x9   : > { %p4680_p5 = pnand %p5517_p3, %p4550_p4 }
   0xb   : > { %p4580_p7 = pneg %p4680_p5 }
   0xd   : > { %p4581_p8 = pnand %p4580_p7, %p4579_p6 }
   0xf   : > { %p4582_p9 = pneg %p4581_p8 }
  0x11   : > { %p4587_p11 = pnand %p4585_p10, %p4582_p9 }
  0x13   : > { %4590 = shalt.err (!%p4587_p11)
}
  0x14   : > { %s4591_s6 = scalar_lea.vmem %s170_s21, 32768  ;;  %p4599_p1 = scmp.lt.s32.totalorder %s170_s21, %s170_s21 }
  0x15   : > { %p4592_p12 = scmp.ne.s32.totalorder %s170_s21, %s4591_s6  ;;  %p4600_p4 = scmp.lt.s32.totalorder %s4591_s6, %s4591_s6 }
  0x17   : > { %p4594_p13 = pnand %p4592_p12, %p4580_p7  ;;  %p4601_p3 = por %p4600_p4, %p4599_p1 }
  0x19   : > { %p4595_p0 = pneg %p4594_p13 }
  0x1b   : > { %p4602_p2 = pnand %p4601_p3, %p4595_p0 }
  0x1d   : > { %4605 = shalt.err (!%p4602_p2)
}
  0x1e   : > { %s4619_s7 = smov 1024   ;;  %s4620_s8 = smov 64  }
  0x1f   : > { %4553 = dma.hbm_to_vmem [thread:$0]  (!%p4680_p5), %s5512_s1, 32768, %s170_s21, [#allocation3], %s4619_s7, %s4619_s7, %s4620_s8  }
  0x20   : > { %p5521_p6 = scmp.ne.s32.totalorder %s5519_s22, 0 }
  0x22   : > { %202 = sbr.rel (%p5521_p6) target bundleno = 808 (0x328), region = 40 }
  0x29   : > { %p5522_p8 = scmp.eq.s32.totalorder %s4667_s19, 0 }
  0x2b   : > { %4611 = dma.done.wait (%p5522_p8), [#allocation3], 32768   ;;  %p5523_p7 = pmov %p5522_p8 }
  0x2c   : > { %v243_v0 = vld [vmem:[#allocation2 + $0x8] sm:$0xff]  ;;  %v245_v2 = vld [vmem:[#allocation2 + $0x18] sm:$0xff]  ;;  %v242_v5 = vld [vmem:[#allocation2] sm:$0xff]  ;;  %p230_p2 = scmp.lt.s32.totalorder %s4667_s19, 1  ;;  %s4621_s15 = smov 32   ;;  %vm942_vm1 = vcmask 64512  }
  0x2d   : > { %4613 = vsyncadd (%p5523_p7), [#allocation3], 4294934528  ;;  %v251_v1 = vld [vmem:[#allocation2 + $0x48] sm:$0xff]  ;;  %v253_v4 = vld [vmem:[#allocation2 + $0x58] sm:$0xff]  ;;  %s4622_s16 = smov 33   ;;  %s4623_s17 = smov 127  }
  0x2e   : > { %v4226_v3 = vpack.c.bf16 %v251_v1, %v243_v0  ;;  %v250_v6 = vld [vmem:[#allocation2 + $0x40] sm:$0xff]  ;;  %v4290_v7 = vpack.c.bf16 %v253_v4, %v245_v2  ;;  %v244_v9 = vld [vmem:[#allocation2 + $0x10] sm:$0xff]  ;;  %v259_v11 = vld [vmem:[#allocation2 + $0x88] sm:$0xff]  ;;  %s5527_s19 = smov (!%p230_p2, %s4667_s19), 1  ;;  %s4624_s20 = smov 97  }
  0x2f   : > { %v4228_v8 = vpack.c.bf16 %v250_v6, %v242_v5  ;;  %v252_v10 = vld [vmem:[#allocation2 + $0x50] sm:$0xff]  ;;  %v267_v13 = vld [vmem:[#allocation2 + $0xc8] sm:$0xff]  ;;  %v261_v14 = vld [vmem:[#allocation2 + $0x98] sm:$0xff]  ;;  %s4224_s11 = sshll.u32 %s5527_s19, 4  ;;  %s4625_s21 = smov 31  }
  0x30   : > { %4227 = vmatprep.subr.bf16.mxu0 %v4226_v3  ;;  %v4292_v12 = vpack.c.bf16 %v252_v10, %v244_v9  ;;  %v269_v15 = vld [vmem:[#allocation2 + $0xd8] sm:$0xff]  ;;  %4291 = vmatprep.subr.bf16.mxu1 %v4290_v7  ;;  %v4230_v16 = vpack.c.bf16 %v267_v13, %v259_v11  ;;  %v258_v18 = vld [vmem:[#allocation2 + $0x80] sm:$0xff]  ;;  %v260_v20 = vld [vmem:[#allocation2 + $0x90] sm:$0xff]  ;;  %s4716_s14 = scalar_lea.vmem %s5511_s0, %s4224_s11  ;;  %s4626_s22 = smov 1  }
  0x31   : > { %4229 = vmatpush1.bf16.msra.mxu0 %v4228_v8  ;;  %v4294_v17 = vpack.c.bf16 %v269_v15, %v261_v14  ;;  %v266_v19 = vld [vmem:[#allocation2 + $0xc0] sm:$0xff]  ;;  %v268_v22 = vld [vmem:[#allocation2 + $0xd0] sm:$0xff]  ;;  %v275_v23 = vld [vmem:[#allocation2 + $0x108] sm:$0xff]  ;;  %s4628_s23 = smov 96   ;;  %s4629_s24 = smov 95  }
  0x32   : > { %4293 = vmatpush1.bf16.msra.mxu1 %v4292_v12  ;;  %v4232_v21 = vpack.c.bf16 %v266_v19, %v258_v18  ;;  %v283_v24 = vld [vmem:[#allocation2 + $0x148] sm:$0xff]  ;;  %4231 = vmatprep.subr.bf16.mxu0 %v4230_v16  ;;  %v4296_v25 = vpack.c.bf16 %v268_v22, %v260_v20  ;;  %v277_v27 = vld [vmem:[#allocation2 + $0x118] sm:$0xff]  ;;  %v274_v29 = vld [vmem:[#allocation2 + $0x100] sm:$0xff]  ;;  %s4225_s6 = sshll.u32 %s5527_s19, 6 }
  0x33   : > { %4295 = vmatprep.subr.bf16.mxu1 %v4294_v17  ;;  %v4234_v26 = vpack.c.bf16 %v283_v24, %v275_v23  ;;  %v285_v28 = vld [vmem:[#allocation2 + $0x158] sm:$0xff]  ;;  %v282_v31 = vld [vmem:[#allocation2 + $0x140] sm:$0xff]  ;;  %v276_v32 = vld [vmem:[#allocation2 + $0x110] sm:$0xff]  ;;  %s239_s9 = scalar_lea.vmem %s5516_s5, %s4225_s6 }
  0x34   : > { %v4298_v30 = vpack.c.bf16 %v285_v28, %v277_v27  ;;  %v284_v33 = vld [vmem:[#allocation2 + $0x150] sm:$0xff]  ;;  %v4236_v34 = vpack.c.bf16 %v282_v31, %v274_v29  ;;  %v291_v35 = vld [vmem:[#allocation2 + $0x188] sm:$0xff]  ;;  %v293_v37 = vld [vmem:[#allocation2 + $0x198] sm:$0xff] }
  0x35   : > { %4233 = vmatpush1.bf16.msra.mxu0 %v4232_v21  ;;  %v299_v36 = vld [vmem:[#allocation2 + $0x1c8] sm:$0xff]  ;;  %v4300_v38 = vpack.c.bf16 %v284_v33, %v276_v32  ;;  %v301_v40 = vld [vmem:[#allocation2 + $0x1d8] sm:$0xff]  ;;  %v290_v41 = vld [vmem:[#allocation2 + $0x180] sm:$0xff] }
  0x36   : > { %4297 = vmatpush1.bf16.msra.mxu1 %v4296_v25  ;;  %4235 = vmatprep.subr.bf16.mxu0 %v4234_v26  ;;  %v4238_v39 = vpack.c.bf16 %v299_v36, %v291_v35  ;;  %v298_v42 = vld [vmem:[#allocation2 + $0x1c0] sm:$0xff]  ;;  %v4302_v43 = vpack.c.bf16 %v301_v40, %v293_v37  ;;  %v292_v44 = vld [vmem:[#allocation2 + $0x190] sm:$0xff]  ;;  %v307_v46 = vld [vmem:[#allocation2 + $0x208] sm:$0xff] }
  0x37   : > { %4299 = vmatprep.subr.bf16.mxu1 %v4298_v30  ;;  %v300_v45 = vld [vmem:[#allocation2 + $0x1d0] sm:$0xff]  ;;  %v315_v47 = vld [vmem:[#allocation2 + $0x248] sm:$0xff]  ;;  %v309_v48 = vld [vmem:[#allocation2 + $0x218] sm:$0xff]  ;;  %v4240_v50 = vpack.c.bf16 %v298_v42, %v290_v41 }
  0x38   : > { %v317_v49 = vld [vmem:[#allocation2 + $0x258] sm:$0xff]  ;;  %v4304_v51 = vpack.c.bf16 %v300_v45, %v292_v44  ;;  %v4242_v52 = vpack.c.bf16 %v315_v47, %v307_v46  ;;  %v306_v53 = vld [vmem:[#allocation2 + $0x200] sm:$0xff]  ;;  %v308_v55 = vld [vmem:[#allocation2 + $0x210] sm:$0xff] }
  0x39   : > { %4237 = vmatpush1.bf16.msra.mxu0 %v4236_v34  ;;  %v314_v54 = vld [vmem:[#allocation2 + $0x240] sm:$0xff]  ;;  %v4306_v56 = vpack.c.bf16 %v317_v49, %v309_v48  ;;  %v316_v57 = vld [vmem:[#allocation2 + $0x250] sm:$0xff]  ;;  %v323_v58 = vld [vmem:[#allocation2 + $0x288] sm:$0xff] }
  0x3a   : > { %4301 = vmatpush1.bf16.msra.mxu1 %v4300_v38  ;;  %4239 = vmatprep.subr.bf16.mxu0 %v4238_v39  ;;  %v331_v59 = vld [vmem:[#allocation2 + $0x2c8] sm:$0xff]  ;;  %v325_v60 = vld [vmem:[#allocation2 + $0x298] sm:$0xff]  ;;  %v4244_v62 = vpack.c.bf16 %v314_v54, %v306_v53  ;;  %v4308_v63 = vpack.c.bf16 %v316_v57, %v308_v55  ;;  %v322_v1 = vld [vmem:[#allocation2 + $0x280] sm:$0xff] }
  0x3b   : > { %4303 = vmatprep.subr.bf16.mxu1 %v4302_v43  ;;  %v333_v61 = vld [vmem:[#allocation2 + $0x2d8] sm:$0xff]  ;;  %v4246_v0 = vpack.c.bf16 %v331_v59, %v323_v58  ;;  %v330_v2 = vld [vmem:[#allocation2 + $0x2c0] sm:$0xff]  ;;  %v324_v3 = vld [vmem:[#allocation2 + $0x290] sm:$0xff] }
  0x3c   : > { %v4310_v4 = vpack.c.bf16 %v333_v61, %v325_v60  ;;  %v332_v5 = vld [vmem:[#allocation2 + $0x2d0] sm:$0xff]  ;;  %v339_v6 = vld [vmem:[#allocation2 + $0x308] sm:$0xff]  ;;  %v341_v8 = vld [vmem:[#allocation2 + $0x318] sm:$0xff]  ;;  %v4248_v10 = vpack.c.bf16 %v330_v2, %v322_v1 }
  0x3d   : > { %4241 = vmatpush1.bf16.msra.mxu0 %v4240_v50  ;;  %v347_v7 = vld [vmem:[#allocation2 + $0x348] sm:$0xff]  ;;  %v349_v9 = vld [vmem:[#allocation2 + $0x358] sm:$0xff]  ;;  %v4312_v11 = vpack.c.bf16 %v332_v5, %v324_v3  ;;  %v338_v13 = vld [vmem:[#allocation2 + $0x300] sm:$0xff] }
  0x3e   : > { %4305 = vmatpush1.bf16.msra.mxu1 %v4304_v51  ;;  %4243 = vmatprep.subr.bf16.mxu0 %v4242_v52  ;;  %v4250_v12 = vpack.c.bf16 %v347_v7, %v339_v6  ;;  %v346_v14 = vld [vmem:[#allocation2 + $0x340] sm:$0xff]  ;;  %v340_v15 = vld [vmem:[#allocation2 + $0x310] sm:$0xff]  ;;  %v4314_v16 = vpack.c.bf16 %v349_v9, %v341_v8  ;;  %v355_v18 = vld [vmem:[#allocation2 + $0x388] sm:$0xff] }
  0x3f   : > { %4307 = vmatprep.subr.bf16.mxu1 %v4306_v56  ;;  %v348_v17 = vld [vmem:[#allocation2 + $0x350] sm:$0xff]  ;;  %v363_v19 = vld [vmem:[#allocation2 + $0x3c8] sm:$0xff]  ;;  %v357_v20 = vld [vmem:[#allocation2 + $0x398] sm:$0xff]  ;;  %v4252_v22 = vpack.c.bf16 %v346_v14, %v338_v13 }
  0x40   : > { %v365_v21 = vld [vmem:[#allocation2 + $0x3d8] sm:$0xff]  ;;  %v4316_v23 = vpack.c.bf16 %v348_v17, %v340_v15  ;;  %v4254_v24 = vpack.c.bf16 %v363_v19, %v355_v18  ;;  %v354_v25 = vld [vmem:[#allocation2 + $0x380] sm:$0xff]  ;;  %v356_v27 = vld [vmem:[#allocation2 + $0x390] sm:$0xff] }
  0x41   : > { %4245 = vmatpush1.bf16.msra.mxu0 %v4244_v62  ;;  %v362_v26 = vld [vmem:[#allocation2 + $0x3c0] sm:$0xff]  ;;  %v4318_v28 = vpack.c.bf16 %v365_v21, %v357_v20  ;;  %v364_v29 = vld [vmem:[#allocation2 + $0x3d0] sm:$0xff]  ;;  %v371_v30 = vld [vmem:[#allocation2 + $0x408] sm:$0xff] }
  0x42   : > { %4309 = vmatpush1.bf16.msra.mxu1 %v4308_v63  ;;  %4247 = vmatprep.subr.bf16.mxu0 %v4246_v0  ;;  %v379_v31 = vld [vmem:[#allocation2 + $0x448] sm:$0xff]  ;;  %v373_v32 = vld [vmem:[#allocation2 + $0x418] sm:$0xff]  ;;  %v4256_v34 = vpack.c.bf16 %v362_v26, %v354_v25  ;;  %v4320_v35 = vpack.c.bf16 %v364_v29, %v356_v27  ;;  %v370_v37 = vld [vmem:[#allocation2 + $0x400] sm:$0xff] }
  0x43   : > { %4311 = vmatprep.subr.bf16.mxu1 %v4310_v4  ;;  %v381_v33 = vld [vmem:[#allocation2 + $0x458] sm:$0xff]  ;;  %v4258_v36 = vpack.c.bf16 %v379_v31, %v371_v30  ;;  %v378_v38 = vld [vmem:[#allocation2 + $0x440] sm:$0xff]  ;;  %v372_v39 = vld [vmem:[#allocation2 + $0x410] sm:$0xff] }
  0x44   : > { %v4322_v40 = vpack.c.bf16 %v381_v33, %v373_v32  ;;  %v380_v41 = vld [vmem:[#allocation2 + $0x450] sm:$0xff]  ;;  %v387_v42 = vld [vmem:[#allocation2 + $0x488] sm:$0xff]  ;;  %v389_v44 = vld [vmem:[#allocation2 + $0x498] sm:$0xff]  ;;  %v4260_v46 = vpack.c.bf16 %v378_v38, %v370_v37 }
  0x45   : > { %4249 = vmatpush1.bf16.msra.mxu0 %v4248_v10  ;;  %v395_v43 = vld [vmem:[#allocation2 + $0x4c8] sm:$0xff]  ;;  %v397_v45 = vld [vmem:[#allocation2 + $0x4d8] sm:$0xff]  ;;  %v4324_v47 = vpack.c.bf16 %v380_v41, %v372_v39  ;;  %v386_v49 = vld [vmem:[#allocation2 + $0x480] sm:$0xff] }
  0x46   : > { %4313 = vmatpush1.bf16.msra.mxu1 %v4312_v11  ;;  %4251 = vmatprep.subr.bf16.mxu0 %v4250_v12  ;;  %v4262_v48 = vpack.c.bf16 %v395_v43, %v387_v42  ;;  %v394_v50 = vld [vmem:[#allocation2 + $0x4c0] sm:$0xff]  ;;  %v388_v51 = vld [vmem:[#allocation2 + $0x490] sm:$0xff]  ;;  %v4326_v52 = vpack.c.bf16 %v397_v45, %v389_v44  ;;  %v403_v54 = vld [vmem:[#allocation2 + $0x508] sm:$0xff] }
  0x47   : > { %4315 = vmatprep.subr.bf16.mxu1 %v4314_v16  ;;  %v396_v53 = vld [vmem:[#allocation2 + $0x4d0] sm:$0xff]  ;;  %v411_v55 = vld [vmem:[#allocation2 + $0x548] sm:$0xff]  ;;  %v405_v56 = vld [vmem:[#allocation2 + $0x518] sm:$0xff]  ;;  %v4264_v58 = vpack.c.bf16 %v394_v50, %v386_v49 }
  0x48   : > { %v413_v57 = vld [vmem:[#allocation2 + $0x558] sm:$0xff]  ;;  %v4328_v59 = vpack.c.bf16 %v396_v53, %v388_v51  ;;  %v4266_v60 = vpack.c.bf16 %v411_v55, %v403_v54  ;;  %v402_v61 = vld [vmem:[#allocation2 + $0x500] sm:$0xff]  ;;  %v404_v63 = vld [vmem:[#allocation2 + $0x510] sm:$0xff] }
  0x49   : > { %4253 = vmatpush1.bf16.msra.mxu0 %v4252_v22  ;;  %v410_v62 = vld [vmem:[#allocation2 + $0x540] sm:$0xff]  ;;  %v4330_v0 = vpack.c.bf16 %v413_v57, %v405_v56  ;;  %v412_v1 = vld [vmem:[#allocation2 + $0x550] sm:$0xff]  ;;  %v419_v2 = vld [vmem:[#allocation2 + $0x588] sm:$0xff] }
  0x4a   : > { %4317 = vmatpush1.bf16.msra.mxu1 %v4316_v23  ;;  %4255 = vmatprep.subr.bf16.mxu0 %v4254_v24  ;;  %v427_v3 = vld [vmem:[#allocation2 + $0x5c8] sm:$0xff]  ;;  %v421_v4 = vld [vmem:[#allocation2 + $0x598] sm:$0xff]  ;;  %v4268_v6 = vpack.c.bf16 %v410_v62, %v402_v61  ;;  %v418_v7 = vld [vmem:[#allocation2 + $0x580] sm:$0xff]  ;;  %v4332_v8 = vpack.c.bf16 %v412_v1, %v404_v63 }
  0x4b   : > { %4319 = vmatprep.subr.bf16.mxu1 %v4318_v28  ;;  %v429_v5 = vld [vmem:[#allocation2 + $0x5d8] sm:$0xff]  ;;  %v4270_v9 = vpack.c.bf16 %v427_v3, %v419_v2  ;;  %v426_v10 = vld [vmem:[#allocation2 + $0x5c0] sm:$0xff]  ;;  %v420_v11 = vld [vmem:[#allocation2 + $0x590] sm:$0xff] }
  0x4c   : > { %v428_v12 = vld [vmem:[#allocation2 + $0x5d0] sm:$0xff]  ;;  %v4334_v13 = vpack.c.bf16 %v429_v5, %v421_v4  ;;  %v435_v14 = vld [vmem:[#allocation2 + $0x608] sm:$0xff]  ;;  %v437_v17 = vld [vmem:[#allocation2 + $0x618] sm:$0xff]  ;;  %v4272_v19 = vpack.c.bf16 %v426_v10, %v418_v7 }
  0x4d   : > { %4257 = vmatpush1.bf16.msra.mxu0 %v4256_v34  ;;  %v443_v15 = vld [vmem:[#allocation2 + $0x648] sm:$0xff]  ;;  %v445_v18 = vld [vmem:[#allocation2 + $0x658] sm:$0xff]  ;;  %v4336_v20 = vpack.c.bf16 %v428_v12, %v420_v11  ;;  %v434_v22 = vld [vmem:[#allocation2 + $0x600] sm:$0xff] }
  0x4e   : > { %4321 = vmatpush1.bf16.msra.mxu1 %v4320_v35  ;;  %4259 = vmatprep.subr.bf16.mxu0 %v4258_v36  ;;  %v4719_v16 = vld [vmem:[%s4716_s14 + $0x8] sm:$0xff]  ;;  %v4274_v21 = vpack.c.bf16 %v443_v15, %v435_v14  ;;  %v442_v23 = vld [vmem:[#allocation2 + $0x640] sm:$0xff]  ;;  %v436_v24 = vld [vmem:[#allocation2 + $0x610] sm:$0xff]  ;;  %v4338_v25 = vpack.c.bf16 %v445_v18, %v437_v17 }
  0x4f   : > { %4323 = vmatprep.subr.bf16.mxu1 %v4322_v40  ;;  %562 = vmatprep.mubr.f32.mxu0 %v4719_v16  ;;  %v444_v26 = vld [vmem:[#allocation2 + $0x650] sm:$0xff]  ;;  %v451_v27 = vld [vmem:[#allocation2 + $0x688] sm:$0xff]  ;;  %v453_v29 = vld [vmem:[#allocation2 + $0x698] sm:$0xff]  ;;  %v4276_v31 = vpack.c.bf16 %v442_v23, %v434_v22 }
  0x50   : > { %633 = vmatprep.mubr.f32.mxu1 %v4719_v16  ;;  %v459_v28 = vld [vmem:[#allocation2 + $0x6c8] sm:$0xff]  ;;  %v461_v30 = vld [vmem:[#allocation2 + $0x6d8] sm:$0xff]  ;;  %v4340_v32 = vpack.c.bf16 %v444_v26, %v436_v24  ;;  %v450_v34 = vld [vmem:[#allocation2 + $0x680] sm:$0xff] }
  0x51   : > { %4261 = vmatpush1.bf16.msra.mxu0 %v4260_v46  ;;  %v4278_v33 = vpack.c.bf16 %v459_v28, %v451_v27  ;;  %v458_v35 = vld [vmem:[#allocation2 + $0x6c0] sm:$0xff]  ;;  %v452_v36 = vld [vmem:[#allocation2 + $0x690] sm:$0xff]  ;;  %v4342_v37 = vpack.c.bf16 %v461_v30, %v453_v29  ;;  %v467_v39 = vld [vmem:[#allocation2 + $0x708] sm:$0xff] }
  0x52   : > { %4325 = vmatpush1.bf16.msra.mxu1 %v4324_v47  ;;  %4263 = vmatprep.subr.bf16.mxu0 %v4262_v48  ;;  %v460_v38 = vld [vmem:[#allocation2 + $0x6d0] sm:$0xff]  ;;  %v475_v40 = vld [vmem:[#allocation2 + $0x748] sm:$0xff]  ;;  %v469_v41 = vld [vmem:[#allocation2 + $0x718] sm:$0xff]  ;;  %v4280_v43 = vpack.c.bf16 %v458_v35, %v450_v34 }
  0x53   : > { %4327 = vmatprep.subr.bf16.mxu1 %v4326_v52  ;;  %v477_v42 = vld [vmem:[#allocation2 + $0x758] sm:$0xff]  ;;  %v4344_v44 = vpack.c.bf16 %v460_v38, %v452_v36  ;;  %v4282_v45 = vpack.c.bf16 %v475_v40, %v467_v39  ;;  %v466_v46 = vld [vmem:[#allocation2 + $0x700] sm:$0xff]  ;;  %v468_v48 = vld [vmem:[#allocation2 + $0x710] sm:$0xff] }
  0x54   : > { %v474_v47 = vld [vmem:[#allocation2 + $0x740] sm:$0xff]  ;;  %v4346_v49 = vpack.c.bf16 %v477_v42, %v469_v41  ;;  %v476_v50 = vld [vmem:[#allocation2 + $0x750] sm:$0xff]  ;;  %v483_v51 = vld [vmem:[#allocation2 + $0x788] sm:$0xff] }
  0x55   : > { %4265 = vmatpush1.bf16.msra.mxu0 %v4264_v58  ;;  %v491_v52 = vld [vmem:[#allocation2 + $0x7c8] sm:$0xff]  ;;  %v485_v53 = vld [vmem:[#allocation2 + $0x798] sm:$0xff]  ;;  %v4284_v55 = vpack.c.bf16 %v474_v47, %v466_v46  ;;  %v4348_v56 = vpack.c.bf16 %v476_v50, %v468_v48  ;;  %v482_v58 = vld [vmem:[#allocation2 + $0x780] sm:$0xff] }
  0x56   : > { %4329 = vmatpush1.bf16.msra.mxu1 %v4328_v59  ;;  %4267 = vmatprep.subr.bf16.mxu0 %v4266_v60  ;;  %v493_v54 = vld [vmem:[#allocation2 + $0x7d8] sm:$0xff]  ;;  %v4286_v57 = vpack.c.bf16 %v491_v52, %v483_v51  ;;  %v490_v59 = vld [vmem:[#allocation2 + $0x7c0] sm:$0xff]  ;;  %v484_v60 = vld [vmem:[#allocation2 + $0x790] sm:$0xff] }
  0x57   : > { %4331 = vmatprep.subr.bf16.mxu1 %v4330_v0  ;;  %v4350_v61 = vpack.c.bf16 %v493_v54, %v485_v53  ;;  %v492_v62 = vld [vmem:[#allocation2 + $0x7d0] sm:$0xff]  ;;  %v247_v63 = vld [vmem:[#allocation2 + $0x28] sm:$0xff]  ;;  %v249_v1 = vld [vmem:[#allocation2 + $0x38] sm:$0xff]  ;;  %v4288_v3 = vpack.c.bf16 %v490_v59, %v482_v58 }
  0x58   : > { %v255_v0 = vld [vmem:[#allocation2 + $0x68] sm:$0xff]  ;;  %v257_v2 = vld [vmem:[#allocation2 + $0x78] sm:$0xff]  ;;  %v4352_v4 = vpack.c.bf16 %v492_v62, %v484_v60  ;;  %v254_v7 = vld [vmem:[#allocation2 + $0x60] sm:$0xff] }
  0x59   : > { %4269 = vmatpush1.bf16.msra.mxu0 %v4268_v6  ;;  %v4354_v5 = vpack.c.bf16 %v255_v0, %v247_v63  ;;  %v246_v6 = vld [vmem:[#allocation2 + $0x20] sm:$0xff]  ;;  %v256_v10 = vld [vmem:[#allocation2 + $0x70] sm:$0xff]  ;;  %v263_v11 = vld [vmem:[#allocation2 + $0xa8] sm:$0xff] }
  0x5a   : > { %4333 = vmatpush1.bf16.msra.mxu1 %v4332_v8  ;;  %4271 = vmatprep.subr.bf16.mxu0 %v4270_v9  ;;  %v248_v8 = vld [vmem:[#allocation2 + $0x30] sm:$0xff]  ;;  %v4418_v9 = vpack.c.bf16 %v257_v2, %v249_v1  ;;  %v271_v12 = vld [vmem:[#allocation2 + $0xe8] sm:$0xff]  ;;  %v273_v14 = vld [vmem:[#allocation2 + $0xf8] sm:$0xff]  ;;  %v4356_v17 = vpack.c.bf16 %v254_v7, %v246_v6 }
  0x5b   : > { %4335 = vmatprep.subr.bf16.mxu1 %v4334_v13  ;;  %v265_v13 = vld [vmem:[#allocation2 + $0xb8] sm:$0xff]  ;;  %v4724_v15 = vld [vmem:[%s4716_s14] sm:$0xff]  ;;  %v4420_v18 = vpack.c.bf16 %v256_v10, %v248_v8  ;;  %v264_v22 = vld [vmem:[#allocation2 + $0xb0] sm:$0xff] }
  0x5c   : > { %v4422_v23 = vpack.c.bf16 %v273_v14, %v265_v13  ;;  %v272_v24 = vld [vmem:[#allocation2 + $0xf0] sm:$0xff]  ;;  %v287_v26 = vld [vmem:[#allocation2 + $0x168] sm:$0xff]  ;;  %v281_v27 = vld [vmem:[#allocation2 + $0x138] sm:$0xff] }
  0x5d   : > { %4273 = vmatpush1.bf16.msra.mxu0 %v4272_v19  ;;  %v4358_v19 = vpack.c.bf16 %v271_v12, %v263_v11  ;;  %v289_v28 = vld [vmem:[#allocation2 + $0x178] sm:$0xff]  ;;  %v4424_v30 = vpack.c.bf16 %v272_v24, %v264_v22  ;;  %v280_v34 = vld [vmem:[#allocation2 + $0x130] sm:$0xff]  ;;  %v303_v38 = vld [vmem:[#allocation2 + $0x1e8] sm:$0xff] }
  0x5e   : > { %4337 = vmatpush1.bf16.msra.mxu1 %v4336_v20  ;;  %4275 = vmatprep.subr.bf16.mxu0 %v4274_v21  ;;  %v262_v20 = vld [vmem:[#allocation2 + $0xa0] sm:$0xff]  ;;  %v4426_v35 = vpack.c.bf16 %v289_v28, %v281_v27  ;;  %v288_v36 = vld [vmem:[#allocation2 + $0x170] sm:$0xff]  ;;  %v297_v39 = vld [vmem:[#allocation2 + $0x1b8] sm:$0xff] }
  0x5f   : > { %4339 = vmatprep.subr.bf16.mxu1 %v4338_v25  ;;  %v270_v21 = vld [vmem:[#allocation2 + $0xe0] sm:$0xff]  ;;  %v279_v25 = vld [vmem:[#allocation2 + $0x128] sm:$0xff]  ;;  %v305_v40 = vld [vmem:[#allocation2 + $0x1f8] sm:$0xff]  ;;  %v4428_v42 = vpack.c.bf16 %v288_v36, %v280_v34 }
  0x60   : > { %v4360_v29 = vpack.c.bf16 %v270_v21, %v262_v20  ;;  %v296_v46 = vld [vmem:[#allocation2 + $0x1b0] sm:$0xff]  ;;  %v4430_v47 = vpack.c.bf16 %v305_v40, %v297_v39  ;;  %v319_v50 = vld [vmem:[#allocation2 + $0x268] sm:$0xff]  ;;  %v313_v51 = vld [vmem:[#allocation2 + $0x238] sm:$0xff] }
  0x61   : > { %4277 = vmatpush1.bf16.msra.mxu0 %v4276_v31  ;;  %v4362_v31 = vpack.c.bf16 %v287_v26, %v279_v25  ;;  %v304_v48 = vld [vmem:[#allocation2 + $0x1f0] sm:$0xff]  ;;  %v321_v52 = vld [vmem:[#allocation2 + $0x278] sm:$0xff]  ;;  %v327_v60 = vld [vmem:[#allocation2 + $0x2a8] sm:$0xff] }
  0x62   : > { %4341 = vmatpush1.bf16.msra.mxu1 %v4340_v32  ;;  %4279 = vmatprep.subr.bf16.mxu0 %v4278_v33  ;;  %v278_v32 = vld [vmem:[#allocation2 + $0x120] sm:$0xff]  ;;  %v4434_v58 = vpack.c.bf16 %v321_v52, %v313_v51  ;;  %v320_v59 = vld [vmem:[#allocation2 + $0x270] sm:$0xff]  ;;  %v329_v62 = vld [vmem:[#allocation2 + $0x2b8] sm:$0xff] }
  0x63   : > { %4343 = vmatprep.subr.bf16.mxu1 %v4342_v37  ;;  %v286_v33 = vld [vmem:[#allocation2 + $0x160] sm:$0xff]  ;;  %v295_v37 = vld [vmem:[#allocation2 + $0x1a8] sm:$0xff]  ;;  %v337_v63 = vld [vmem:[#allocation2 + $0x2f8] sm:$0xff] }
  0x64   : > { %v4364_v41 = vpack.c.bf16 %v286_v33, %v278_v32  ;;  %v4438_v6 = vpack.c.bf16 %v337_v63, %v329_v62  ;;  %v336_v7 = vld [vmem:[#allocation2 + $0x2f0] sm:$0xff]  ;;  %v343_v8 = vld [vmem:[#allocation2 + $0x328] sm:$0xff]  ;;  %v345_v10 = vld [vmem:[#allocation2 + $0x338] sm:$0xff] }
  0x65   : > { %4281 = vmatpush1.bf16.msra.mxu0 %v4280_v43  ;;  %v4366_v43 = vpack.c.bf16 %v303_v38, %v295_v37  ;;  %v353_v11 = vld [vmem:[#allocation2 + $0x378] sm:$0xff]  ;;  %v352_v21 = vld [vmem:[#allocation2 + $0x370] sm:$0xff]  ;;  %v359_v22 = vld [vmem:[#allocation2 + $0x3a8] sm:$0xff] }
  0x66   : > { %4345 = vmatpush1.bf16.msra.mxu1 %v4344_v44  ;;  %4283 = vmatprep.subr.bf16.mxu0 %v4282_v45  ;;  %v294_v44 = vld [vmem:[#allocation2 + $0x1a0] sm:$0xff]  ;;  %v4442_v20 = vpack.c.bf16 %v353_v11, %v345_v10  ;;  %v361_v24 = vld [vmem:[#allocation2 + $0x3b8] sm:$0xff]  ;;  %v368_v33 = vld [vmem:[#allocation2 + $0x3f0] sm:$0xff] }
  0x67   : > { %4347 = vmatprep.subr.bf16.mxu1 %v4346_v49  ;;  %v302_v45 = vld [vmem:[#allocation2 + $0x1e0] sm:$0xff]  ;;  %v311_v49 = vld [vmem:[#allocation2 + $0x228] sm:$0xff]  ;;  %v369_v25 = vld [vmem:[#allocation2 + $0x3f8] sm:$0xff] }
  0x68   : > { %v4368_v53 = vpack.c.bf16 %v302_v45, %v294_v44  ;;  %v4370_v54 = vpack.c.bf16 %v319_v50, %v311_v49  ;;  %v4446_v32 = vpack.c.bf16 %v369_v25, %v361_v24  ;;  %v375_v34 = vld [vmem:[#allocation2 + $0x428] sm:$0xff]  ;;  %v377_v36 = vld [vmem:[#allocation2 + $0x438] sm:$0xff]  ;;  %v384_v45 = vld [vmem:[#allocation2 + $0x470] sm:$0xff] }
  0x69   : > { %4285 = vmatpush1.bf16.msra.mxu0 %v4284_v55  ;;  %v310_v55 = vld [vmem:[#allocation2 + $0x220] sm:$0xff]  ;;  %v385_v37 = vld [vmem:[#allocation2 + $0x478] sm:$0xff] }
  0x6a   : > { %4349 = vmatpush1.bf16.msra.mxu1 %v4348_v56  ;;  %4287 = vmatprep.subr.bf16.mxu0 %v4286_v57  ;;  %v318_v56 = vld [vmem:[#allocation2 + $0x260] sm:$0xff]  ;;  %v312_v57 = vld [vmem:[#allocation2 + $0x230] sm:$0xff]  ;;  %v4450_v44 = vpack.c.bf16 %v385_v37, %v377_v36  ;;  %v401_v49 = vld [vmem:[#allocation2 + $0x4f8] sm:$0xff] }
  0x6b   : > { %4351 = vmatprep.subr.bf16.mxu1 %v4350_v61  ;;  %v335_v61 = vld [vmem:[#allocation2 + $0x2e8] sm:$0xff]  ;;  %v4372_v0 = vpack.c.bf16 %v318_v56, %v310_v55  ;;  %v4436_v1 = vpack.c.bf16 %v320_v59, %v312_v57  ;;  %v400_v56 = vld [vmem:[#allocation2 + $0x4f0] sm:$0xff]  ;;  %v409_v59 = vld [vmem:[#allocation2 + $0x538] sm:$0xff] }
  0x6c   : > { %v4374_v2 = vpack.c.bf16 %v335_v61, %v327_v60  ;;  %v407_v57 = vld [vmem:[#allocation2 + $0x528] sm:$0xff]  ;;  %v417_v60 = vld [vmem:[#allocation2 + $0x578] sm:$0xff] }
  0x6d   : > { %4289 = vmatpush1.bf16.msra.mxu0 %v4288_v3  ;;  %v326_v3 = vld [vmem:[#allocation2 + $0x2a0] sm:$0xff] }
  0x6e   : > { %4353 = vmatpush1.bf16.msra.mxu1 %v4352_v4  ;;  %4355 = vmatprep.subr.bf16.mxu0 %v4354_v5  ;;  %v334_v4 = vld [vmem:[#allocation2 + $0x2e0] sm:$0xff]  ;;  %v328_v5 = vld [vmem:[#allocation2 + $0x2b0] sm:$0xff] }
  0x6f   : > { %4419 = vmatprep.subr.bf16.mxu1 %v4418_v9  ;;  %v351_v9 = vld [vmem:[#allocation2 + $0x368] sm:$0xff]  ;;  %v4376_v12 = vpack.c.bf16 %v334_v4, %v326_v3  ;;  %v4440_v13 = vpack.c.bf16 %v336_v7, %v328_v5  ;;  %v4458_v3 = vpack.c.bf16 %v417_v60, %v409_v59  ;;  %v416_v4 = vld [vmem:[#allocation2 + $0x570] sm:$0xff]  ;;  %v425_v7 = vld [vmem:[#allocation2 + $0x5b8] sm:$0xff] }
  0x70   : > { %563 = vmatmul.mubr.f32.vlgmr.msra.gmra.mrb[0].mxu0 %v4724_v15  ;;  %v4378_v14 = vpack.c.bf16 %v351_v9, %v343_v8  ;;  %v423_v5 = vld [vmem:[#allocation2 + $0x5a8] sm:$0xff]  ;;  %v433_v8 = vld [vmem:[#allocation2 + $0x5f8] sm:$0xff] }
  0x71   : > { %634 = vmatmul.mubr.f32.vlgmr.msra.gmra.mrb[0].mxu1 %v4724_v15  ;;  %4357 = vmatpush1.bf16.msra.mxu0 %v4356_v17  ;;  %v342_v17 = vld [vmem:[#allocation2 + $0x320] sm:$0xff] }
  0x72   : > { %4421 = vmatpush1.bf16.msra.mxu1 %v4420_v18  ;;  %4359 = vmatprep.subr.bf16.mxu0 %v4358_v19  ;;  %v350_v18 = vld [vmem:[#allocation2 + $0x360] sm:$0xff]  ;;  %v344_v19 = vld [vmem:[#allocation2 + $0x330] sm:$0xff] }
  0x73   : > { %4423 = vmatprep.subr.bf16.mxu1 %v4422_v23  ;;  %704 = vmatprep.mubr.f32.mxu0 %v4719_v16  ;;  %v367_v23 = vld [vmem:[#allocation2 + $0x3e8] sm:$0xff]  ;;  %v4380_v26 = vpack.c.bf16 %v350_v18, %v342_v17  ;;  %v4444_v27 = vpack.c.bf16 %v352_v21, %v344_v19  ;;  %v4462_v17 = vpack.c.bf16 %v433_v8, %v425_v7  ;;  %v432_v18 = vld [vmem:[#allocation2 + $0x5f0] sm:$0xff]  ;;  %v441_v21 = vld [vmem:[#allocation2 + $0x638] sm:$0xff] }
  0x74   : > { %775 = vmatprep.mubr.f32.mxu1 %v4719_v16  ;;  %v4432_v16 = vpack.c.bf16 %v304_v48, %v296_v46  ;;  %v4382_v28 = vpack.c.bf16 %v367_v23, %v359_v22  ;;  %v391_v46 = vld [vmem:[#allocation2 + $0x4a8] sm:$0xff]  ;;  %v393_v48 = vld [vmem:[#allocation2 + $0x4b8] sm:$0xff] }
  0x75   : > { %4361 = vmatpush1.bf16.msra.mxu0 %v4360_v29  ;;  %v358_v29 = vld [vmem:[#allocation2 + $0x3a0] sm:$0xff]  ;;  %v4454_v55 = vpack.c.bf16 %v401_v49, %v393_v48  ;;  %v439_v19 = vld [vmem:[#allocation2 + $0x628] sm:$0xff]  ;;  %v449_v22 = vld [vmem:[#allocation2 + $0x678] sm:$0xff] }
  0x76   : > { %4425 = vmatpush1.bf16.msra.mxu1 %v4424_v30  ;;  %4363 = vmatprep.subr.bf16.mxu0 %v4362_v31  ;;  %v366_v30 = vld [vmem:[#allocation2 + $0x3e0] sm:$0xff]  ;;  %v360_v31 = vld [vmem:[#allocation2 + $0x3b0] sm:$0xff] }
  0x77   : > { %4427 = vmatprep.subr.bf16.mxu1 %v4426_v35  ;;  %v383_v35 = vld [vmem:[#allocation2 + $0x468] sm:$0xff]  ;;  %v4384_v38 = vpack.c.bf16 %v366_v30, %v358_v29  ;;  %v4448_v39 = vpack.c.bf16 %v368_v33, %v360_v31  ;;  %v4466_v29 = vpack.c.bf16 %v449_v22, %v441_v21  ;;  %v448_v30 = vld [vmem:[#allocation2 + $0x670] sm:$0xff]  ;;  %v457_v33 = vld [vmem:[#allocation2 + $0x6b8] sm:$0xff] }
  0x78   : > { %v4386_v40 = vpack.c.bf16 %v383_v35, %v375_v34  ;;  %v455_v31 = vld [vmem:[#allocation2 + $0x6a8] sm:$0xff]  ;;  %v465_v34 = vld [vmem:[#allocation2 + $0x6f8] sm:$0xff] }
  0x79   : > { %4365 = vmatpush1.bf16.msra.mxu0 %v4364_v41  ;;  %v374_v41 = vld [vmem:[#allocation2 + $0x420] sm:$0xff] }
  0x7a   : > { %4429 = vmatpush1.bf16.msra.mxu1 %v4428_v42  ;;  %4367 = vmatprep.subr.bf16.mxu0 %v4366_v43  ;;  %v382_v42 = vld [vmem:[#allocation2 + $0x460] sm:$0xff]  ;;  %v376_v43 = vld [vmem:[#allocation2 + $0x430] sm:$0xff] }
  0x7b   : > { %4431 = vmatprep.subr.bf16.mxu1 %v4430_v47  ;;  %v399_v47 = vld [vmem:[#allocation2 + $0x4e8] sm:$0xff]  ;;  %v4388_v50 = vpack.c.bf16 %v382_v42, %v374_v41  ;;  %v4452_v51 = vpack.c.bf16 %v384_v45, %v376_v43  ;;  %v4470_v41 = vpack.c.bf16 %v465_v34, %v457_v33  ;;  %v464_v42 = vld [vmem:[#allocation2 + $0x6f0] sm:$0xff]  ;;  %v473_v45 = vld [vmem:[#allocation2 + $0x738] sm:$0xff] }
  0x7c   : > { %v4390_v52 = vpack.c.bf16 %v399_v47, %v391_v46  ;;  %v471_v43 = vld [vmem:[#allocation2 + $0x728] sm:$0xff]  ;;  %v481_v46 = vld [vmem:[#allocation2 + $0x778] sm:$0xff] }
  0x7d   : > { %4369 = vmatpush1.bf16.msra.mxu0 %v4368_v53  ;;  %v390_v53 = vld [vmem:[#allocation2 + $0x4a0] sm:$0xff] }
  0x7e   : > { %4433 = vmatpush1.bf16.msra.mxu1 %v4432_v16  ;;  %4371 = vmatprep.subr.bf16.mxu0 %v4370_v54  ;;  %v398_v16 = vld [vmem:[#allocation2 + $0x4e0] sm:$0xff]  ;;  %v392_v54 = vld [vmem:[#allocation2 + $0x4b0] sm:$0xff] }
  0x7f   : > { %4435 = vmatprep.subr.bf16.mxu1 %v4434_v58  ;;  %v415_v58 = vld [vmem:[#allocation2 + $0x568] sm:$0xff]  ;;  %v4392_v61 = vpack.c.bf16 %v398_v16, %v390_v53  ;;  %v4456_v62 = vpack.c.bf16 %v400_v56, %v392_v54  ;;  %v4474_v53 = vpack.c.bf16 %v481_v46, %v473_v45  ;;  %v480_v16 = vld [vmem:[#allocation2 + $0x770] sm:$0xff]  ;;  %v489_v56 = vld [vmem:[#allocation2 + $0x7b8] sm:$0xff] }
  0x80   : > { %v4394_v63 = vpack.c.bf16 %v415_v58, %v407_v57  ;;  %v487_v54 = vld [vmem:[#allocation2 + $0x7a8] sm:$0xff]  ;;  %v497_v57 = vld [vmem:[#allocation2 + $0x7f8] sm:$0xff] }
  0x81   : > { %4373 = vmatpush1.bf16.msra.mxu0 %v4372_v0  ;;  %v406_v0 = vld [vmem:[#allocation2 + $0x520] sm:$0xff] }
  0x82   : > { %4437 = vmatpush1.bf16.msra.mxu1 %v4436_v1  ;;  %4375 = vmatprep.subr.bf16.mxu0 %v4374_v2  ;;  %v414_v1 = vld [vmem:[#allocation2 + $0x560] sm:$0xff]  ;;  %v408_v2 = vld [vmem:[#allocation2 + $0x530] sm:$0xff] }
  0x83   : > { %4439 = vmatprep.subr.bf16.mxu1 %v4438_v6  ;;  %v431_v6 = vld [vmem:[#allocation2 + $0x5e8] sm:$0xff]  ;;  %v4396_v9 = vpack.c.bf16 %v414_v1, %v406_v0  ;;  %v4460_v10 = vpack.c.bf16 %v416_v4, %v408_v2  ;;  %v488_v0 = vld [vmem:[#allocation2 + $0x7b0] sm:$0xff] }
  0x84   : > { %v4398_v11 = vpack.c.bf16 %v431_v6, %v423_v5  ;;  %v496_v1 = vld [vmem:[#allocation2 + $0x7f0] sm:$0xff] }
  0x85   : > { %4377 = vmatpush1.bf16.msra.mxu0 %v4376_v12  ;;  %v422_v12 = vld [vmem:[#allocation2 + $0x5a0] sm:$0xff] }
  0x86   : > { %4441 = vmatpush1.bf16.msra.mxu1 %v4440_v13  ;;  %4379 = vmatprep.subr.bf16.mxu0 %v4378_v14  ;;  %v430_v13 = vld [vmem:[#allocation2 + $0x5e0] sm:$0xff]  ;;  %v424_v14 = vld [vmem:[#allocation2 + $0x5b0] sm:$0xff] }
  0x87   : > { %4443 = vmatprep.subr.bf16.mxu1 %v4442_v20  ;;  %v447_v20 = vld [vmem:[#allocation2 + $0x668] sm:$0xff]  ;;  %v4400_v23 = vpack.c.bf16 %v430_v13, %v422_v12  ;;  %v4464_v24 = vpack.c.bf16 %v432_v18, %v424_v14  ;;  %v798_v12 = vlaneseq }
  0x88   : > { %v4402_v25 = vpack.c.bf16 %v447_v20, %v439_v19  ;;  %v4164_v19 = vld [vmem:[%s5515_s4 + $0x1] ss:$8 sm:$0xf] }
  0x89   : > { %4381 = vmatpush1.bf16.msra.mxu0 %v4380_v26  ;;  %v438_v26 = vld [vmem:[#allocation2 + $0x620] sm:$0xff]  ;;  %v4870_v22 = vand.u32 127, %v798_v12 }
  0x8a   : > { %4445 = vmatpush1.bf16.msra.mxu1 %v4444_v27  ;;  %4383 = vmatprep.subr.bf16.mxu0 %v4382_v28  ;;  %v446_v27 = vld [vmem:[#allocation2 + $0x660] sm:$0xff]  ;;  %v440_v28 = vld [vmem:[#allocation2 + $0x630] sm:$0xff] }
  0x8b   : > { %4447 = vmatprep.subr.bf16.mxu1 %v4446_v32  ;;  %v463_v32 = vld [vmem:[#allocation2 + $0x6e8] sm:$0xff]  ;;  %v4404_v35 = vpack.c.bf16 %v446_v27, %v438_v26  ;;  %v4468_v36 = vpack.c.bf16 %v448_v30, %v440_v28  ;;  %vm878_vm0 = vcmp.lt.s32.totalorder %v4870_v22, 32  ;;  %vm2955_vm2 = vcmp.lt.s32.totalorder %v4870_v22, 97 }
  0x8c   : > { %v4406_v37 = vpack.c.bf16 %v463_v32, %v455_v31  ;;  %v4165_v20 = vld [vmem:[%s5515_s4 + $0x1] ss:$8 sm:$0xf0]  ;;  %vm800_vm3 = vcmp.lt.s32.totalorder %v4870_v22, 33  ;;  %vm1533_vm4 = vcmp.lt.s32.totalorder %v4870_v22, 31  ;;  %vm1908_vm5 = vcmp.lt.s32.totalorder %v4870_v22, 1 }
  0x8d   : > { %4385 = vmatpush1.bf16.msra.mxu0 %v4384_v38  ;;  %v454_v38 = vld [vmem:[#allocation2 + $0x6a0] sm:$0xff]  ;;  %vm2580_vm6 = vcmp.lt.s32.totalorder %v4870_v22, 127  ;;  %vm3330_vm7 = vcmp.lt.s32.totalorder %v4870_v22, 96  ;;  %vm3705_vm8 = vcmp.lt.s32.totalorder %v4870_v22, 95 }
  0x8e   : > { %4449 = vmatpush1.bf16.msra.mxu1 %v4448_v39  ;;  %4387 = vmatprep.subr.bf16.mxu0 %v4386_v40  ;;  %v462_v39 = vld [vmem:[#allocation2 + $0x6e0] sm:$0xff]  ;;  %v456_v40 = vld [vmem:[#allocation2 + $0x6b0] sm:$0xff] }
  0x8f   : > { %4451 = vmatprep.subr.bf16.mxu1 %v4450_v44  ;;  %v479_v44 = vld [vmem:[#allocation2 + $0x768] sm:$0xff]  ;;  %v4408_v47 = vpack.c.bf16 %v462_v39, %v454_v38  ;;  %v4472_v48 = vpack.c.bf16 %v464_v42, %v456_v40 }
  0x90   : > { %v4410_v49 = vpack.c.bf16 %v479_v44, %v471_v43 }
  0x91   : > { %4389 = vmatpush1.bf16.msra.mxu0 %v4388_v50  ;;  %v470_v50 = vld [vmem:[#allocation2 + $0x720] sm:$0xff] }
  0x92   : > { %4453 = vmatpush1.bf16.msra.mxu1 %v4452_v51  ;;  %4391 = vmatprep.subr.bf16.mxu0 %v4390_v52  ;;  %v478_v51 = vld [vmem:[#allocation2 + $0x760] sm:$0xff]  ;;  %v472_v52 = vld [vmem:[#allocation2 + $0x730] sm:$0xff] }
  0x93   : > { %4455 = vmatprep.subr.bf16.mxu1 %v4454_v55  ;;  %v495_v55 = vld [vmem:[#allocation2 + $0x7e8] sm:$0xff]  ;;  %v4412_v58 = vpack.c.bf16 %v478_v51, %v470_v50  ;;  %v4476_v59 = vpack.c.bf16 %v480_v16, %v472_v52 }
  0x94   : > { %v4414_v60 = vpack.c.bf16 %v495_v55, %v487_v54 }
  0x95   : > { %4393 = vmatpush1.bf16.msra.mxu0 %v4392_v61  ;;  %v486_v61 = vld [vmem:[#allocation2 + $0x7a0] sm:$0xff] }
  0x96   : > { %4457 = vmatpush1.bf16.msra.mxu1 %v4456_v62  ;;  %4395 = vmatprep.subr.bf16.mxu0 %v4394_v63  ;;  %v494_v62 = vld [vmem:[#allocation2 + $0x7e0] sm:$0xff]  ;;  %v4478_v63 = vpack.c.bf16 %v497_v57, %v489_v56 }
  0x97   : > { %4459 = vmatprep.subr.bf16.mxu1 %v4458_v3  ;;  %v4416_v2 = vpack.c.bf16 %v494_v62, %v486_v61  ;;  %v4480_v3 = vpack.c.bf16 %v496_v1, %v488_v0  ;;  %v810_v62 = vld [vmem:[%s5515_s4] ss:$8 sm:$0xf0] }
  0x99   : > { %4397 = vmatpush1.bf16.msra.mxu0 %v4396_v9 }
  0x9a   : > { %4461 = vmatpush1.bf16.msra.mxu1 %v4460_v10  ;;  %4399 = vmatprep.subr.bf16.mxu0 %v4398_v11 }
  0x9b   : > { %4463 = vmatprep.subr.bf16.mxu1 %v4462_v17  ;;  %v4854_v17 = vshrl.u32 %v798_v12, 7 }
  0x9d   : > { %4401 = vmatpush1.bf16.msra.mxu0 %v4400_v23  ;;  %v4873_v23 = vsub.s32 3, %v4854_v17  ;;  %v4920_v38 = vsub.s32 2, %v4854_v17  ;;  %v4998_v12 = vsub.s32 6, %v4854_v17 }
  0x9e   : > { %4465 = vmatpush1.bf16.msra.mxu1 %v4464_v24  ;;  %4403 = vmatprep.subr.bf16.mxu0 %v4402_v25  ;;  %v4875_v24 = vor.u32 %v4165_v20, %v4164_v19  ;;  %v5003_v19 = vsub.s32 4, %v4854_v17 }
  0x9f   : > { %4467 = vmatprep.subr.bf16.mxu1 %v4466_v29 }
  0xa0   : > { %v907_v27 = vrot.slane %v4875_v24, %v4873_v23  ;;  %v903_v42 = vrot.slane %v4875_v24, %v4920_v38 }
  0xa1   : > { %4405 = vmatpush1.bf16.msra.mxu0 %v4404_v35  ;;  %v4064_v35 = vld [vmem:[%s5514_s3] sm:$0xff] }
  0xa2   : > { %4469 = vmatpush1.bf16.msra.mxu1 %v4468_v36  ;;  %4407 = vmatprep.subr.bf16.mxu0 %v4406_v37  ;;  %v4630_v36 = vmov 0   ;;  %v4917_v37 = vsub.s32 1, %v4854_v17 }
  0xa3   : > { %4471 = vmatprep.subr.bf16.mxu1 %v4470_v41  ;;  %4577 = vset.pattern.permute.xlu0 %v4630_v36 }
  0xa4   : > { %v899_v41 = vrot.slane %v4875_v24, %v4917_v37 }
  0xa5   : > { %4409 = vmatpush1.bf16.msra.mxu0 %v4408_v47 }
  0xa6   : > { %4473 = vmatpush1.bf16.msra.mxu1 %v4472_v48  ;;  %4411 = vmatprep.subr.bf16.mxu0 %v4410_v49  ;;  %v4942_v48 = vld [vmem:[%s5513_s2 + $0x8] sm:$0xff] }
  0xa7   : > { %4475 = vmatprep.subr.bf16.mxu1 %v4474_v53 }
  0xa9   : > { %4413 = vmatpush1.bf16.msra.mxu0 %v4412_v58 }
  0xaa   : > { %4477 = vmatpush1.bf16.msra.mxu1 %v4476_v59  ;;  %4415 = vmatprep.subr.bf16.mxu0 %v4414_v60  ;;  %v4977_v59 = vsub.s32 7, %v4854_v17  ;;  %v809_v60 = vld [vmem:[%s5515_s4] ss:$8 sm:$0xf] }
  0xab   : > { %4479 = vmatprep.subr.bf16.mxu1 %v4478_v63  ;;  %v4986_v63 = vsub.s32 0, %v4854_v17 }
  0xad   : > { %4417 = vmatpush1.bf16.msra.mxu0 %v4416_v2  ;;  %v895_v1 = vrot.slane %v4875_v24, %v4986_v63  ;;  %v923_v2 = vrot.slane %v4875_v24, %v4977_v59 }
  0xae   : > { %4481 = vmatpush1.bf16.msra.mxu1 %v4480_v3  ;;  %v4995_v3 = vsub.s32 5, %v4854_v17 }
  0xb0   : > { %705 = vmatmul.mubr.f32.vlgmr.msra.gmra.mrb[2].mxu0 %v4724_v15 }
  0xb1   : > { %776 = vmatmul.mubr.f32.vlgmr.msra.gmra.mrb[2].mxu1 %v4724_v15  ;;  %v4627_v15 = vmov 0.0  }
  0xb2   : > { %1081 = vmatprep.mubr.f32.mxu1 %v4627_v15  ;;  %1010 = vmatprep.mubr.f32.mxu0 %v4627_v15 }
 0x143   : > { %v4732_v4 = vpop.f32.mrb[0].mxu0 }
 0x144   : > { %v4734_v5 = vpop.f32.mrb[0].mxu1  ;;  %862 = vrot.lane.b32.xlu0 %v4732_v4, %s4621_s15  ;;  %v4738_v6 = vpop.f32.mrb[1].mxu0 }
 0x145   : > { %866 = vrot.lane.b32.xlu1 %v4734_v5, %s4621_s15  ;;  %v4742_v7 = vpop.f32.mrb[1].mxu1 }
 0x148   : > { %782 = vrot.lane.b32.xlu0 %v4732_v4, %s4622_s16 }
 0x149   : > { %2568 = vrot.lane.b32.xlu1 %v4734_v5, %s4623_s17 }
 0x14c   : > { %786 = vrot.lane.b32.xlu0 %v4734_v5, %s4622_s16 }
 0x14d   : > { %2943 = vrot.lane.b32.xlu1 %v4734_v5, %s4624_s20 }
 0x150   : > { %1517 = vrot.lane.b32.xlu0 %v4732_v4, %s4625_s21 }
 0x151   : > { %868 = vrot.lane.b32.xlu1 %v4742_v7, %s4621_s15 }
 0x154   : > { %1521 = vrot.lane.b32.xlu0 %v4734_v5, %s4625_s21 }
 0x155   : > { %784 = vrot.lane.b32.xlu1 %v4738_v6, %s4622_s16 }
 0x158   : > { %1892 = vrot.lane.b32.xlu0 %v4732_v4, %s4626_s22 }
 0x159   : > { %788 = vrot.lane.b32.xlu1 %v4742_v7, %s4622_s16 }
 0x15c   : > { %1896 = vrot.lane.b32.xlu0 %v4734_v5, %s4626_s22 }
 0x15d   : > { %1519 = vrot.lane.b32.xlu1 %v4738_v6, %s4625_s21 }
 0x160   : > { %2564 = vrot.lane.b32.xlu0 %v4732_v4, %s4623_s17 }
 0x161   : > { %1523 = vrot.lane.b32.xlu1 %v4742_v7, %s4625_s21 }
 0x164   : > { %864 = vrot.lane.b32.xlu0 %v4738_v6, %s4621_s15 }
 0x165   : > { %1894 = vrot.lane.b32.xlu1 %v4738_v6, %s4626_s22 }
 0x168   : > { %2566 = vrot.lane.b32.xlu0 %v4738_v6, %s4623_s17 }
 0x169   : > { %1898 = vrot.lane.b32.xlu1 %v4742_v7, %s4626_s22 }
 0x16c   : > { %2570 = vrot.lane.b32.xlu0 %v4742_v7, %s4623_s17 }
 0x170   : > { %2941 = vrot.lane.b32.xlu0 %v4738_v6, %s4624_s20 }
 0x174   : > { %2945 = vrot.lane.b32.xlu0 %v4742_v7, %s4624_s20 }
 0x183   : > { %v4788_v8 = vpop.f32.mrb[2].mxu0 }
 0x184   : > { %v4790_v9 = vpop.f32.mrb[2].mxu1  ;;  %870 = vrot.lane.b32.xlu1 %v4788_v8, %s4621_s15  ;;  %v4794_v10 = vpop.f32.mrb[3].mxu0 }
 0x185   : > { %2576 = vrot.lane.b32.xlu0 %v4790_v9, %s4623_s17  ;;  %v4798_v11 = vpop.f32.mrb[3].mxu1 }
 0x188   : > { %874 = vrot.lane.b32.xlu1 %v4790_v9, %s4621_s15 }
 0x189   : > { %876 = vrot.lane.b32.xlu0 %v4798_v11, %s4621_s15 }
 0x18c   : > { %790 = vrot.lane.b32.xlu1 %v4788_v8, %s4622_s16 }
 0x18d   : > { %872 = vrot.lane.b32.xlu0 %v4794_v10, %s4621_s15 }
 0x190   : > { %794 = vrot.lane.b32.xlu1 %v4790_v9, %s4622_s16 }
 0x191   : > { %796 = vrot.lane.b32.xlu0 %v4798_v11, %s4622_s16 }
 0x194   : > { %1525 = vrot.lane.b32.xlu1 %v4788_v8, %s4625_s21 }
 0x195   : > { %792 = vrot.lane.b32.xlu0 %v4794_v10, %s4622_s16 }
 0x198   : > { %1529 = vrot.lane.b32.xlu1 %v4790_v9, %s4625_s21 }
 0x199   : > { %1531 = vrot.lane.b32.xlu0 %v4798_v11, %s4625_s21 }
 0x19c   : > { %1900 = vrot.lane.b32.xlu1 %v4788_v8, %s4626_s22 }
 0x19d   : > { %1527 = vrot.lane.b32.xlu0 %v4794_v10, %s4625_s21 }
 0x1a0   : > { %1904 = vrot.lane.b32.xlu1 %v4790_v9, %s4626_s22 }
 0x1a1   : > { %1906 = vrot.lane.b32.xlu0 %v4798_v11, %s4626_s22 }
 0x1a4   : > { %2572 = vrot.lane.b32.xlu1 %v4788_v8, %s4623_s17 }
 0x1a5   : > { %1902 = vrot.lane.b32.xlu0 %v4794_v10, %s4626_s22 }
 0x1a8   : > { %2947 = vrot.lane.b32.xlu1 %v4788_v8, %s4624_s20 }
 0x1a9   : > { %2939 = vrot.lane.b32.xlu0 %v4732_v4, %s4624_s20 }
 0x1ac   : > { %3318 = vrot.lane.b32.xlu1 %v4734_v5, %s4628_s23 }
 0x1ad   : > { %2951 = vrot.lane.b32.xlu0 %v4790_v9, %s4624_s20 }
 0x1b0   : > { %3322 = vrot.lane.b32.xlu1 %v4788_v8, %s4628_s23 }
 0x1b1   : > { %3316 = vrot.lane.b32.xlu0 %v4738_v6, %s4628_s23 }
 0x1b4   : > { %3693 = vrot.lane.b32.xlu1 %v4734_v5, %s4629_s24 }
 0x1b5   : > { %3320 = vrot.lane.b32.xlu0 %v4742_v7, %s4628_s23 }
 0x1b6   : > { %v4848_v13 = vpop.permute.xlu0 %862 }
 0x1b7   : > { %v867_v14 = vpop.permute.xlu1 %866 }
 0x1b8   : > { %3697 = vrot.lane.b32.xlu1 %v4788_v8, %s4629_s24 }
 0x1b9   : > { %3314 = vrot.lane.b32.xlu0 %v4732_v4, %s4628_s23 }
 0x1ba   : > { %v4856_v18 = vpop.permute.xlu0 %782 }
 0x1bb   : > { %v4864_v21 = vpop.permute.xlu1 %2568 }
 0x1bc   : > { %2574 = vrot.lane.b32.xlu1 %v4794_v10, %s4623_s17 }
 0x1bd   : > { %3326 = vrot.lane.b32.xlu0 %v4790_v9, %s4628_s23 }
 0x1be   : > { %v4877_v25 = vpop.permute.xlu0 %786 }
 0x1bf   : > { %v2944_v26 = vpop.permute.xlu1 %2943 }
 0x1c0   : > { %2578 = vrot.lane.b32.xlu1 %v4798_v11, %s4623_s17 }
 0x1c1   : > { %3691 = vrot.lane.b32.xlu0 %v4738_v6, %s4629_s24 }
 0x1c2   : > { %v4886_v28 = vpop.permute.xlu0 %1517 }
 0x1c3   : > { %v4888_v29 = vpop.permute.xlu1 %868 }
 0x1c4   : > { %v883_v30 = vsel %vm878_vm0, %v867_v14, %v4888_v29  ;;  %2949 = vrot.lane.b32.xlu1 %v4794_v10, %s4624_s20 }
 0x1c5   : > { %v935_v31 = vmul.f32 %v907_v27, %v883_v30  ;;  %3695 = vrot.lane.b32.xlu0 %v4742_v7, %s4629_s24  ;;  %v4176_v27 = vld [vmem:[%s5515_s4 + $0x2] ss:$8 sm:$0xf0] }
 0x1c6   : > { %v4897_v32 = vpop.permute.xlu0 %1521 }
 0x1c7   : > { %1017 = vmatprep.subr.mxu1 %v935_v31  ;;  %v4924_v40 = vpop.permute.xlu1 %784 }
 0x1c8   : > { %2953 = vrot.lane.b32.xlu1 %v4798_v11, %s4624_s20 }
 0x1c9   : > { %3689 = vrot.lane.b32.xlu0 %v4732_v4, %s4629_s24 }
 0x1ca   : > { %v4903_v33 = vpop.permute.xlu0 %1892 }
 0x1cb   : > { %v4944_v49 = vpop.permute.xlu1 %788 }
 0x1cc   : > { %3324 = vrot.lane.b32.xlu1 %v4794_v10, %s4628_s23 }
 0x1cd   : > { %3701 = vrot.lane.b32.xlu0 %v4790_v9, %s4629_s24 }
 0x1ce   : > { %v4909_v34 = vpop.permute.xlu0 %1896 }
 0x1cf   : > { %v4953_v52 = vpop.permute.xlu1 %1519 }
 0x1d0   : > { %3328 = vrot.lane.b32.xlu1 %v4798_v11, %s4628_s23 }
 0x1d1   : > { %4067 = vperm.xlu0 %4577, %v4064_v35  }
 0x1d2   : > { %v4922_v39 = vpop.permute.xlu0 %2564 }
 0x1d3   : > { %v4963_v54 = vpop.permute.xlu1 %1523 }
 0x1d4   : > { %3699 = vrot.lane.b32.xlu1 %v4794_v10, %s4629_s24 }
 0x1d6   : > { %v865_v43 = vpop.permute.xlu0 %864 }
 0x1d7   : > { %v884_v44 = vsel %vm878_vm0, %v865_v43, %v867_v14  ;;  %v885_v45 = vsel %vm878_vm0, %v4848_v13, %v865_v43  ;;  %v4972_v57 = vpop.permute.xlu1 %1894  ;;  %v5000_v14 = vor.u32 %v810_v62, %v809_v60 }
 0x1d8   : > { %v933_v46 = vmul.f32 %v899_v41, %v885_v45  ;;  %v934_v47 = vmul.f32 %v903_v42, %v884_v44  ;;  %3703 = vrot.lane.b32.xlu1 %v4798_v11, %s4629_s24  ;;  %v915_v41 = vrot.slane %v4875_v24, %v4995_v3  ;;  %v919_v42 = vrot.slane %v4875_v24, %v4998_v12 }
 0x1d9   : > { %v820_v43 = vrot.slane %v5000_v14, %v4917_v37  ;;  %v824_v44 = vrot.slane %v5000_v14, %v4920_v38 }
 0x1da   : > { %946 = vmatprep.subr.mxu0 %v933_v46  ;;  %1018 = vmatpush1.msra.mxu1 %v934_v47  ;;  %v4946_v50 = vpop.permute.xlu0 %2566  ;;  %v828_v47 = vrot.slane %v5000_v14, %v4873_v23 }
 0x1db   : > { %4168 = vmatmul.mubr.msk.f32.vlgmr.msra.gmra.mrb[4].mxu1 %vm942_vm1, %v4942_v48  ;;  %v4974_v58 = vpop.permute.xlu1 %1898 }
 0x1dc   : > { %1223 = vmatprep.mubr.f32.mxu1 %v4627_v15 }
 0x1de   : > { %v4951_v51 = vpop.permute.xlu0 %2570 }
 0x1e2   : > { %v4956_v53 = vpop.permute.xlu0 %2941 }
 0x1e3   : > { %v4961_v16 = vsel %vm2955_vm2, %v4956_v53, %v2944_v26 }
 0x1e6   : > { %v4965_v55 = vpop.permute.xlu0 %2945 }
 0x1e7   : > { %v4970_v56 = vsel %vm2955_vm2, %v2944_v26, %v4965_v55  ;;  %v4175_v26 = vld [vmem:[%s5515_s4 + $0x2] ss:$8 sm:$0xf] }
 0x1e8   : > { %5524 = vst [vmem:[#allocation5_spill] sm:$0xff] %v4970_v56  ;;  %v5025_v45 = vor.u32 %v4176_v27, %v4175_v26  ;;  %v806_v27 = vsel %vm800_vm3, %v4924_v40, %v4877_v25 }
 0x1f6   : > { %v871_v61 = vpop.permute.xlu1 %870 }
 0x1f7   : > { %v4988_v0 = vpop.permute.xlu0 %2576  ;;  %v882_v60 = vsel %vm878_vm0, %v4888_v29, %v871_v61 }
 0x1fa   : > { %v875_v20 = vpop.permute.xlu1 %874 }
 0x1fb   : > { %v877_v30 = vpop.permute.xlu0 %876 }
 0x1fc   : > { %v886_v31 = vsel %vm878_vm0, %v877_v30, %v4848_v13  ;;  %v879_v17 = vsel %vm878_vm0, %v875_v20, %v877_v30  ;;  %v911_v13 = vrot.slane %v4875_v24, %v5003_v19  ;;  %v805_v24 = vsel %vm800_vm3, %v4877_v25, %v4944_v49 }
 0x1fd   : > { %v932_v35 = vmul.f32 %v895_v1, %v886_v31  ;;  %v939_v36 = vmul.f32 %v923_v2, %v879_v17  ;;  %v816_v1 = vrot.slane %v5000_v14, %v4986_v63  ;;  %v807_v2 = vsel %vm800_vm3, %v4856_v18, %v4924_v40  ;;  %v4182_v40 = vld [vmem:[%s5515_s4 + $0x3] ss:$8 sm:$0xf] }
 0x1fe   : > { %v791_v46 = vpop.permute.xlu1 %790  ;;  %v844_v17 = vrot.slane %v5000_v14, %v4977_v59  ;;  %v854_v56 = vmul.f32 %v820_v43, %v807_v2  ;;  %v856_v25 = vmul.f32 %v828_v47, %v805_v24 }
 0x1ff   : > { %947 = vmatpush1.msra.mxu0 %v932_v35  ;;  %1159 = vmatprep.subr.mxu1 %v939_v36  ;;  %v873_v62 = vpop.permute.xlu0 %872  ;;  %v1562_v35 = vrot.slane %v5025_v45, %v4873_v23  ;;  %v936_v36 = vmul.f32 %v911_v13, %v882_v60 }
 0x200   : > { %v880_v26 = vsel %vm878_vm0, %v873_v62, %v875_v20  ;;  %v881_v29 = vsel %vm878_vm0, %v871_v61, %v873_v62  ;;  %4167 = vmatmul.mubr.msk.f32.vlgmr.msra.gmra.mrb[4].mxu0 %vm942_vm1, %v4942_v48  ;;  %v1554_v20 = vrot.slane %v5025_v45, %v4917_v37  ;;  %v1558_v61 = vrot.slane %v5025_v45, %v4920_v38 }
 0x201   : > { %v937_v30 = vmul.f32 %v915_v41, %v881_v29  ;;  %v938_v31 = vmul.f32 %v919_v42, %v880_v26  ;;  %1152 = vmatprep.mubr.f32.mxu0 %v4627_v15  ;;  %v4183_v41 = vld [vmem:[%s5515_s4 + $0x3] ss:$8 sm:$0xf0]  ;;  %v836_v26 = vrot.slane %v5000_v14, %v4995_v3  ;;  %v855_v29 = vmul.f32 %v824_v44, %v806_v27 }
 0x202   : > { %v795_v62 = vpop.permute.xlu1 %794  ;;  %v840_v44 = vrot.slane %v5000_v14, %v4998_v12  ;;  %v5083_v2 = vor.u32 %v4183_v41, %v4182_v40  ;;  %v1550_v27 = vrot.slane %v5025_v45, %v4986_v63 }
 0x203   : > { %1088 = vmatprep.subr.mxu0 %v937_v30  ;;  %1160 = vmatpush1.msra.mxu1 %v938_v31  ;;  %v797_v42 = vpop.permute.xlu0 %796  ;;  %v804_v30 = vsel %vm800_vm3, %v4944_v49, %v791_v46  ;;  %v1540_v31 = vsel %vm1533_vm4, %v4886_v28, %v4953_v52  ;;  %v1539_v49 = vsel %vm1533_vm4, %v4953_v52, %v4897_v32 }
 0x204   : > { %v801_v13 = vsel %vm800_vm3, %v795_v62, %v797_v42  ;;  %v808_v43 = vsel %vm800_vm3, %v797_v42, %v4856_v18  ;;  %1089 = vmatpush1.msra.mxu0 %v936_v36  ;;  %4170 = vmatmul.mubr.msk.f32.vlgmr.msra.gmra.mrb[6].mxu1 %vm942_vm1, %v4942_v48  ;;  %v832_v18 = vrot.slane %v5000_v14, %v5003_v19 }
 0x205   : > { %v853_v47 = vmul.f32 %v816_v1, %v808_v43  ;;  %v860_v60 = vmul.f32 %v844_v17, %v801_v13  ;;  %1304 = vmatprep.subr.mxu1 %v856_v25  ;;  %4169 = vmatmul.mubr.msk.f32.vlgmr.msra.gmra.mrb[6].mxu0 %vm942_vm1, %v4942_v48  ;;  %v861_v1 = vld [vmem:[%s5513_s2] sm:$0xff]  ;;  %v1538_v48 = vsel %vm1533_vm4, %v4897_v32, %v4963_v54 }
 0x206   : > { %1233 = vmatprep.subr.mxu0 %v854_v56  ;;  %1305 = vmatpush1.msra.mxu1 %v855_v29  ;;  %v1526_v24 = vpop.permute.xlu1 %1525  ;;  %v1578_v14 = vrot.slane %v5025_v45, %v4977_v59  ;;  %v1590_v41 = vmul.f32 %v1562_v35, %v1538_v48  ;;  %v857_v42 = vmul.f32 %v832_v18, %v804_v30  ;;  %v4177_v18 = vld [vmem:[%s5513_s2 + $0x10] sm:$0xff] }
 0x207   : > { %1234 = vmatpush1.msra.mxu0 %v853_v47  ;;  %1368 = vmatprep.mubr.f32.mxu1 %v4627_v15  ;;  %v793_v56 = vpop.permute.xlu0 %792  ;;  %v1933_v32 = vrot.slane %v5083_v2, %v4920_v38  ;;  %v1589_v35 = vmul.f32 %v1558_v61, %v1539_v49  ;;  %v1574_v61 = vrot.slane %v5025_v45, %v4998_v12 }
 0x208   : > { %1446 = vmatprep.subr.mxu1 %v860_v60  ;;  %v802_v17 = vsel %vm800_vm3, %v793_v56, %v795_v62  ;;  %v803_v36 = vsel %vm800_vm3, %v791_v46, %v793_v56  ;;  %1297 = vmatprep.mubr.f32.mxu0 %v4627_v15  ;;  %v1929_v62 = vrot.slane %v5083_v2, %v4917_v37 }
 0x209   : > { %v858_v25 = vmul.f32 %v836_v26, %v803_v36  ;;  %v859_v40 = vmul.f32 %v840_v44, %v802_v17  ;;  %4172 = vmatmul.mubr.msk.f32.vlgmr.msra.gmra.mrb[4].mxu1 %vm942_vm1, %v861_v1  ;;  %4171 = vmatmul.mubr.msk.f32.vlgmr.msra.gmra.mrb[4].mxu0 %vm942_vm1, %v861_v1  ;;  %v1588_v46 = vmul.f32 %v1554_v20, %v1540_v31 }
 0x20a   : > { %v1530_v29 = vpop.permute.xlu1 %1529  ;;  %1510 = vmatprep.mubr.f32.mxu1 %v4627_v15  ;;  %1439 = vmatprep.mubr.f32.mxu0 %v4627_v15  ;;  %v1570_v26 = vrot.slane %v5025_v45, %v4995_v3  ;;  %v1937_v60 = vrot.slane %v5083_v2, %v4873_v23  ;;  %v1566_v44 = vrot.slane %v5025_v45, %v5003_v19 }
 0x20b   : > { %1375 = vmatprep.subr.mxu0 %v858_v25  ;;  %1447 = vmatpush1.msra.mxu1 %v859_v40  ;;  %v1532_v52 = vpop.permute.xlu0 %1531  ;;  %v1537_v48 = vsel %vm1533_vm4, %v4963_v54, %v1526_v24  ;;  %v1953_v30 = vrot.slane %v5083_v2, %v4977_v59  ;;  %v1915_v56 = vsel %vm1908_vm5, %v4903_v33, %v4972_v57 }
 0x20c   : > { %v1534_v13 = vsel %vm1533_vm4, %v1530_v29, %v1532_v52  ;;  %v1541_v43 = vsel %vm1533_vm4, %v1532_v52, %v4886_v28  ;;  %1376 = vmatpush1.msra.mxu0 %v857_v42  ;;  %1671 = vmatprep.subr.mxu1 %v1590_v41  ;;  %v1914_v54 = vsel %vm1908_vm5, %v4972_v57, %v4909_v34 }
 0x20d   : > { %v1587_v20 = vmul.f32 %v1550_v27, %v1541_v43  ;;  %v1594_v47 = vmul.f32 %v1578_v14, %v1534_v13  ;;  %4174 = vmatmul.mubr.msk.f32.vlgmr.msra.gmra.mrb[6].mxu1 %vm942_vm1, %v861_v1  ;;  %4173 = vmatmul.mubr.msk.f32.vlgmr.msra.gmra.mrb[6].mxu0 %vm942_vm1, %v861_v1  ;;  %v1925_v27 = vrot.slane %v5083_v2, %v4986_v63  ;;  %v4195_v13 = vld [vmem:[%s5515_s4 + $0x5] ss:$8 sm:$0xf0] }
 0x20e   : > { %1600 = vmatprep.subr.mxu0 %v1588_v46  ;;  %1672 = vmatpush1.msra.mxu1 %v1589_v35  ;;  %v1901_v28 = vpop.permute.xlu1 %1900  ;;  %v1913_v1 = vsel %vm1908_vm5, %v4909_v34, %v4974_v58  ;;  %v1591_v25 = vmul.f32 %v1566_v44, %v1537_v48  ;;  %v1945_v34 = vrot.slane %v5083_v2, %v4995_v3  ;;  %v4194_v35 = vld [vmem:[%s5515_s4 + $0x5] ss:$8 sm:$0xf] }
 0x20f   : > { %1601 = vmatpush1.msra.mxu0 %v1587_v20  ;;  %1735 = vmatprep.mubr.f32.mxu1 %v4627_v15  ;;  %v1528_v45 = vpop.permute.xlu0 %1527  ;;  %v1965_v49 = vmul.f32 %v1937_v60, %v1913_v1  ;;  %v1964_v57 = vmul.f32 %v1933_v32, %v1914_v54  ;;  %v1941_v32 = vrot.slane %v5083_v2, %v5003_v19 }
 0x210   : > { %1813 = vmatprep.subr.mxu1 %v1594_v47  ;;  %v1535_v14 = vsel %vm1533_vm4, %v1528_v45, %v1530_v29  ;;  %v1536_v31 = vsel %vm1533_vm4, %v1526_v24, %v1528_v45  ;;  %1664 = vmatprep.mubr.f32.mxu0 %v4627_v15  ;;  %v1963_v24 = vmul.f32 %v1929_v62, %v1915_v56  ;;  %v4189_v45 = vld [vmem:[%s5513_s2 + $0x20] sm:$0xff] }
 0x211   : > { %v1592_v17 = vmul.f32 %v1570_v26, %v1536_v31  ;;  %v1593_v36 = vmul.f32 %v1574_v61, %v1535_v14  ;;  %4179 = vmatmul.mubr.msk.f32.vlgmr.msra.gmra.mrb[4].mxu1 %vm942_vm1, %v4177_v18  ;;  %4178 = vmatmul.mubr.msk.f32.vlgmr.msra.gmra.mrb[4].mxu0 %vm942_vm1, %v4177_v18  ;;  %v1949_v62 = vrot.slane %v5083_v2, %v4998_v12 }
 0x212   : > { %v1905_v40 = vpop.permute.xlu1 %1904  ;;  %1877 = vmatprep.mubr.f32.mxu1 %v4627_v15  ;;  %1806 = vmatprep.mubr.f32.mxu0 %v4627_v15  ;;  %v1912_v2 = vsel %vm1908_vm5, %v4974_v58, %v1901_v28  ;;  %v5206_v58 = vor.u32 %v4195_v13, %v4194_v35  ;;  %v2585_v14 = vsel %vm2580_vm6, %v4864_v21, %v4951_v51 }
 0x213   : > { %1742 = vmatprep.subr.mxu0 %v1592_v17  ;;  %1814 = vmatpush1.msra.mxu1 %v1593_v36  ;;  %v1907_v41 = vpop.permute.xlu0 %1906  ;;  %v1966_v44 = vmul.f32 %v1941_v32, %v1912_v2  ;;  %v5282_v36 = vld [vmem:[%s5513_s2 + $0x28] sm:$0xff] }
 0x214   : > { %v1909_v42 = vsel %vm1908_vm5, %v1905_v40, %v1907_v41  ;;  %v1916_v29 = vsel %vm1908_vm5, %v1907_v41, %v4903_v33  ;;  %1743 = vmatpush1.msra.mxu0 %v1591_v25  ;;  %2046 = vmatprep.subr.mxu1 %v1965_v49  ;;  %v4184_v33 = vld [vmem:[%s5513_s2 + $0x18] sm:$0xff]  ;;  %v2601_v1 = vrot.slane %v5206_v58, %v4917_v37 }
 0x215   : > { %v1962_v46 = vmul.f32 %v1925_v27, %v1916_v29  ;;  %v1969_v52 = vmul.f32 %v1953_v30, %v1909_v42  ;;  %4181 = vmatmul.mubr.msk.f32.vlgmr.msra.gmra.mrb[6].mxu1 %vm942_vm1, %v4177_v18  ;;  %4180 = vmatmul.mubr.msk.f32.vlgmr.msra.gmra.mrb[6].mxu0 %vm942_vm1, %v4177_v18  ;;  %v2609_v27 = vrot.slane %v5206_v58, %v4873_v23  ;;  %v4208_v29 = vld [vmem:[%s5515_s4 + $0x7] ss:$8 sm:$0xf] }
 0x216   : > { %1975 = vmatprep.subr.mxu0 %v1963_v24  ;;  %2047 = vmatpush1.msra.mxu1 %v1964_v57  ;;  %v5184_v26 = vpop.permute.xlu1 %2572  ;;  %v2586_v30 = vsel %vm2580_vm6, %v4946_v50, %v4864_v21  ;;  %v2613_v24 = vrot.slane %v5206_v58, %v5003_v19  ;;  %v2617_v41 = vrot.slane %v5206_v58, %v4995_v3 }
 0x217   : > { %1976 = vmatpush1.msra.mxu0 %v1962_v46  ;;  %2110 = vmatprep.mubr.f32.mxu1 %v4627_v15  ;;  %v1903_v43 = vpop.permute.xlu0 %1902  ;;  %v2584_v48 = vsel %vm2580_vm6, %v4951_v51, %v5184_v26  ;;  %v2635_v31 = vmul.f32 %v2601_v1, %v2586_v30  ;;  %v4209_v46 = vld [vmem:[%s5515_s4 + $0x7] ss:$8 sm:$0xf0] }
 0x218   : > { %2188 = vmatprep.subr.mxu1 %v1969_v52  ;;  %v1910_v20 = vsel %vm1908_vm5, %v1903_v43, %v1905_v40  ;;  %v1911_v47 = vsel %vm1908_vm5, %v1901_v28, %v1903_v43  ;;  %2039 = vmatprep.mubr.f32.mxu0 %v4627_v15  ;;  %v2625_v43 = vrot.slane %v5206_v58, %v4977_v59 }
 0x219   : > { %v1967_v61 = vmul.f32 %v1945_v34, %v1911_v47  ;;  %v1968_v60 = vmul.f32 %v1949_v62, %v1910_v20  ;;  %4186 = vmatmul.mubr.msk.f32.vlgmr.msra.gmra.mrb[4].mxu1 %vm942_vm1, %v4184_v33  ;;  %4185 = vmatmul.mubr.msk.f32.vlgmr.msra.gmra.mrb[4].mxu0 %vm942_vm1, %v4184_v33 }
 0x21a   : > { %v5208_v18 = vpop.permute.xlu1 %2947  ;;  %2252 = vmatprep.mubr.f32.mxu1 %v4627_v15  ;;  %2181 = vmatprep.mubr.f32.mxu0 %v4627_v15 }
 0x21b   : > { %2117 = vmatprep.subr.mxu0 %v1967_v61  ;;  %2189 = vmatpush1.msra.mxu1 %v1968_v60  ;;  %v5212_v28 = vpop.permute.xlu0 %2939  ;;  %v5332_v61 = vor.u32 %v4209_v46, %v4208_v29 }
 0x21c   : > { %2118 = vmatpush1.msra.mxu0 %v1966_v44  ;;  %2343 = vmatprep.subr.mxu1 %v4742_v7  ;;  %v2962_v35 = vsel %vm2955_vm2, %v5212_v28, %v4956_v53 }
 0x21d   : > { %4188 = vmatmul.mubr.msk.f32.vlgmr.msra.gmra.mrb[6].mxu1 %vm942_vm1, %v4184_v33  ;;  %4187 = vmatmul.mubr.msk.f32.vlgmr.msra.gmra.mrb[6].mxu0 %vm942_vm1, %v4184_v33  ;;  %v2621_v33 = vrot.slane %v5206_v58, %v4998_v12  ;;  %v3359_v29 = vrot.slane %v5332_v61, %v4873_v23 }
 0x21e   : > { %2272 = vmatprep.subr.mxu0 %v4738_v6  ;;  %2344 = vmatpush1.msra.mxu1 %v4734_v5  ;;  %v5228_v7 = vpop.permute.xlu1 %3318  ;;  %v2605_v5 = vrot.slane %v5206_v58, %v4920_v38  ;;  %v2597_v6 = vrot.slane %v5206_v58, %v4986_v63 }
 0x21f   : > { %2273 = vmatpush1.msra.mxu0 %v4732_v4  ;;  %2485 = vmatprep.subr.mxu1 %v4798_v11  ;;  %v5239_v56 = vpop.permute.xlu0 %2951  ;;  %v2637_v4 = vmul.f32 %v2609_v27, %v2584_v48  ;;  %v2587_v11 = vsel %vm2580_vm6, %v4922_v39, %v4946_v50  ;;  %v4202_v50 = vld [vmem:[%s5515_s4 + $0x6] ss:$8 sm:$0xf0]  ;;  %v2959_v48 = vsel %vm2955_vm2, %v4965_v55, %v5208_v18 }
 0x220   : > { %2407 = vmatprep.mubr.f32.mxu1 %v4627_v15  ;;  %2414 = vmatprep.subr.mxu0 %v4794_v10  ;;  %v2636_v51 = vmul.f32 %v2605_v5, %v2585_v14  ;;  %v2634_v54 = vmul.f32 %v2597_v6, %v2587_v11  ;;  %v3355_v55 = vrot.slane %v5332_v61, %v4920_v38  ;;  %v4216_v6 = vld [vmem:[%s5515_s4 + $0x40] ss:$8 sm:$0xf0] }
 0x221   : > { %2336 = vmatprep.mubr.f32.mxu0 %v4627_v15  ;;  %4191 = vmatmul.mubr.msk.f32.vlgmr.msra.gmra.mrb[4].mxu1 %vm942_vm1, %v4189_v45  ;;  %v3347_v5 = vrot.slane %v5332_v61, %v4986_v63 }
 0x222   : > { %2486 = vmatpush1.msra.mxu1 %v4790_v9  ;;  %4190 = vmatmul.mubr.msk.f32.vlgmr.msra.gmra.mrb[4].mxu0 %vm942_vm1, %v4189_v45  ;;  %v5259_v10 = vpop.permute.xlu1 %3322  ;;  %v4201_v9 = vld [vmem:[%s5515_s4 + $0x6] ss:$8 sm:$0xf] }
 0x223   : > { %2415 = vmatpush1.msra.mxu0 %v4788_v8  ;;  %2718 = vmatprep.subr.mxu1 %v2637_v4  ;;  %v5262_v21 = vpop.permute.xlu0 %3316  ;;  %v5287_v49 = vor.u32 %v4202_v50, %v4201_v9  ;;  %v4203_v4 = vld [vmem:[%s5513_s2 + $0x30] sm:$0xff]  ;;  %v5525_v50 = vld [vmem:[#allocation5_spill] sm:$0xff] }
 0x224   : > { %2647 = vmatprep.subr.mxu0 %v2635_v31  ;;  %2549 = vmatprep.mubr.f32.mxu1 %v4627_v15 }
 0x225   : > { %2478 = vmatprep.mubr.f32.mxu0 %v4627_v15  ;;  %4193 = vmatmul.mubr.msk.f32.vlgmr.msra.gmra.mrb[6].mxu1 %vm942_vm1, %v4189_v45  ;;  %v2976_v34 = vrot.slane %v5287_v49, %v4917_v37  ;;  %v2972_v42 = vrot.slane %v5287_v49, %v4986_v63  ;;  %v2980_v20 = vrot.slane %v5287_v49, %v4920_v38 }
 0x226   : > { %2719 = vmatpush1.msra.mxu1 %v2636_v51  ;;  %4192 = vmatmul.mubr.msk.f32.vlgmr.msra.gmra.mrb[6].mxu0 %vm942_vm1, %v4189_v45  ;;  %v5271_v8 = vpop.permute.xlu1 %3693  ;;  %v2984_v47 = vrot.slane %v5287_v49, %v4873_v23  ;;  %v2988_v53 = vrot.slane %v5287_v49, %v5003_v19  ;;  %v2992_v1 = vrot.slane %v5287_v49, %v4995_v3 }
 0x227   : > { %2648 = vmatpush1.msra.mxu0 %v2634_v54  ;;  %v5276_v17 = vpop.permute.xlu0 %3320  ;;  %2711 = vmatprep.mubr.f32.mxu0 %v4627_v15  ;;  %v3009_v44 = vmul.f32 %v2972_v42, %v2962_v35  ;;  %v2996_v11 = vrot.slane %v5287_v49, %v4998_v12  ;;  %v3336_v51 = vsel %vm3330_vm7, %v5262_v21, %v5228_v7 }
 0x228   : > { %2782 = vmatprep.mubr.f32.mxu1 %v4627_v15  ;;  %v3012_v31 = vmul.f32 %v2984_v47, %v2959_v48  ;;  %v3000_v42 = vrot.slane %v5287_v49, %v4977_v59  ;;  %v3367_v49 = vrot.slane %v5332_v61, %v4995_v3 }
 0x229   : > { %4198 = vmatmul.mubr.msk.f32.vlgmr.msra.gmra.mrb[4].mxu1 %vm942_vm1, %v5282_v36 }
 0x22a   : > { %v5289_v25 = vpop.permute.xlu1 %3697  ;;  %4197 = vmatmul.mubr.msk.f32.vlgmr.msra.gmra.mrb[4].mxu0 %vm942_vm1, %v5282_v36  ;;  %2924 = vmatprep.mubr.f32.mxu1 %v4627_v15 }
 0x22b   : > { %v5294_v40 = vpop.permute.xlu0 %3314  ;;  %2853 = vmatprep.mubr.f32.mxu0 %v4627_v15 }
 0x22e   : > { %v2575_v57 = vpop.permute.xlu1 %2574 }
 0x22f   : > { %v2582_v52 = vsel %vm2580_vm6, %v2575_v57, %v4988_v0  ;;  %v2583_v62 = vsel %vm2580_vm6, %v5184_v26, %v2575_v57  ;;  %v5317_v32 = vpop.permute.xlu0 %3326  ;;  %v3010_v26 = vmul.f32 %v2976_v34, %v4961_v16 }
 0x230   : > { %v2638_v13 = vmul.f32 %v2613_v24, %v2583_v62  ;;  %v2639_v2 = vmul.f32 %v2617_v41, %v2582_v52  ;;  %v3011_v24 = vmul.f32 %v2980_v20, %v5525_v50 }
 0x232   : > { %v2579_v60 = vpop.permute.xlu1 %2578  ;;  %2789 = vmatprep.subr.mxu0 %v2639_v2 }
 0x233   : > { %v2581_v58 = vsel %vm2580_vm6, %v4988_v0, %v2579_v60  ;;  %v2588_v27 = vsel %vm2580_vm6, %v2579_v60, %v4922_v39  ;;  %v5342_v16 = vpop.permute.xlu0 %3691  ;;  %2790 = vmatpush1.msra.mxu0 %v2638_v13  ;;  %v4215_v39 = vld [vmem:[%s5515_s4 + $0x40] ss:$8 sm:$0xf]  ;;  %v3351_v0 = vrot.slane %v5332_v61, %v4917_v37 }
 0x234   : > { %v2640_v45 = vmul.f32 %v2621_v33, %v2581_v58  ;;  %v2641_v30 = vmul.f32 %v2625_v43, %v2588_v27  ;;  %4199 = vmatmul.mubr.msk.f32.vlgmr.msra.gmra.mrb[6].mxu0 %vm942_vm1, %v5282_v36  ;;  %3022 = vmatprep.subr.mxu0 %v3010_v26  ;;  %v5394_v46 = vor.u32 %v4216_v6, %v4215_v39  ;;  %v4217_v6 = vld [vmem:[%s5513_s2 + $0x40] sm:$0xff] }
 0x235   : > { %3023 = vmatpush1.msra.mxu0 %v3009_v44  ;;  %3086 = vmatprep.mubr.f32.mxu0 %v4627_v15  ;;  %v3385_v52 = vmul.f32 %v3351_v0, %v3336_v51 }
 0x236   : > { %v2950_v14 = vpop.permute.xlu1 %2949  ;;  %2860 = vmatprep.subr.mxu1 %v2641_v30  ;;  %v3722_v20 = vrot.slane %v5394_v46, %v4986_v63  ;;  %v3711_v63 = vsel %vm3705_vm8, %v5342_v16, %v5271_v8  ;;  %v3734_v48 = vrot.slane %v5394_v46, %v4873_v23  ;;  %v3738_v39 = vrot.slane %v5394_v46, %v5003_v19 }
 0x237   : > { %v2957_v54 = vsel %vm2955_vm2, %v2950_v14, %v5239_v56  ;;  %v2958_v9 = vsel %vm2955_vm2, %v5208_v18, %v2950_v14  ;;  %2861 = vmatpush1.msra.mxu1 %v2640_v45  ;;  %v5382_v57 = vpop.permute.xlu0 %3695  ;;  %v3337_v18 = vsel %vm3330_vm7, %v5294_v40, %v5262_v21  ;;  %v3334_v21 = vsel %vm3330_vm7, %v5276_v17, %v5259_v10 }
 0x238   : > { %v3013_v41 = vmul.f32 %v2988_v53, %v2958_v9  ;;  %v3014_v34 = vmul.f32 %v2992_v1, %v2957_v54  ;;  %4200 = vmatmul.mubr.msk.f32.vlgmr.msra.gmra.mrb[6].mxu1 %vm942_vm1, %v5282_v36  ;;  %4204 = vmatmul.mubr.msk.f32.vlgmr.msra.gmra.mrb[4].mxu0 %vm942_vm1, %v4203_v4  ;;  %v3363_v36 = vrot.slane %v5332_v61, %v5003_v19  ;;  %v4210_v53 = vld [vmem:[%s5513_s2 + $0x38] sm:$0xff] }
 0x239   : > { %3093 = vmatprep.subr.mxu1 %v3012_v31  ;;  %3157 = vmatprep.mubr.f32.mxu1 %v4627_v15  ;;  %v3384_v13 = vmul.f32 %v3347_v5, %v3337_v18  ;;  %v3387_v26 = vmul.f32 %v3359_v29, %v3334_v21  ;;  %v3709_v23 = vsel %vm3705_vm8, %v5382_v57, %v5289_v25 }
 0x23a   : > { %3094 = vmatpush1.msra.mxu1 %v3011_v24  ;;  %v2954_v62 = vpop.permute.xlu1 %2953  ;;  %3164 = vmatprep.subr.mxu0 %v3014_v34  ;;  %v3746_v14 = vrot.slane %v5394_v46, %v4998_v12 }
 0x23b   : > { %v2956_v33 = vsel %vm2955_vm2, %v5239_v56, %v2954_v62  ;;  %v2963_v35 = vsel %vm2955_vm2, %v2954_v62, %v5212_v28  ;;  %3165 = vmatpush1.msra.mxu0 %v3013_v41  ;;  %3228 = vmatprep.mubr.f32.mxu0 %v4627_v15  ;;  %v3335_v56 = vsel %vm3330_vm7, %v5228_v7, %v5276_v17  ;;  %v5424_v47 = vpop.permute.xlu0 %3689 }
 0x23c   : > { %v3015_v2 = vmul.f32 %v2996_v11, %v2956_v33  ;;  %v3016_v43 = vmul.f32 %v3000_v42, %v2963_v35  ;;  %4205 = vmatmul.mubr.msk.f32.vlgmr.msra.gmra.mrb[4].mxu1 %vm942_vm1, %v4203_v4  ;;  %v3726_v28 = vrot.slane %v5394_v46, %v4917_v37  ;;  %4206 = vmatmul.mubr.msk.f32.vlgmr.msra.gmra.mrb[6].mxu0 %vm942_vm1, %v4203_v4 }
 0x23d   : > { %3397 = vmatprep.subr.mxu0 %v3385_v52  ;;  %v3371_v7 = vrot.slane %v5332_v61, %v4998_v12  ;;  %v3375_v37 = vrot.slane %v5332_v61, %v4977_v59  ;;  %3299 = vmatprep.mubr.f32.mxu1 %v4627_v15  ;;  %v3386_v58 = vmul.f32 %v3355_v55, %v3335_v56 }
 0x23e   : > { %3398 = vmatpush1.msra.mxu0 %v3384_v13  ;;  %v3325_v60 = vpop.permute.xlu1 %3324  ;;  %3235 = vmatprep.subr.mxu1 %v3016_v43  ;;  %v3730_v61 = vrot.slane %v5394_v46, %v4920_v38  ;;  %v3760_v45 = vmul.f32 %v3726_v28, %v3711_v63  ;;  %v3742_v38 = vrot.slane %v5394_v46, %v4995_v3 }
 0x23f   : > { %v3332_v17 = vsel %vm3330_vm7, %v3325_v60, %v5317_v32  ;;  %v3333_v44 = vsel %vm3330_vm7, %v5259_v10, %v3325_v60  ;;  %3236 = vmatpush1.msra.mxu1 %v3015_v2  ;;  %3461 = vmatprep.mubr.f32.mxu0 %v4627_v15  ;;  %v3712_v10 = vsel %vm3705_vm8, %v5424_v47, %v5342_v16 }
 0x240   : > { %v3388_v27 = vmul.f32 %v3363_v36, %v3333_v44  ;;  %v3389_v1 = vmul.f32 %v3367_v49, %v3332_v17  ;;  %4207 = vmatmul.mubr.msk.f32.vlgmr.msra.gmra.mrb[6].mxu1 %vm942_vm1, %v4203_v4  ;;  %4211 = vmatmul.mubr.msk.f32.vlgmr.msra.gmra.mrb[4].mxu0 %vm942_vm1, %v4210_v53  ;;  %v3759_v19 = vmul.f32 %v3722_v20, %v3712_v10 }
 0x241   : > { %3468 = vmatprep.subr.mxu1 %v3387_v26  ;;  %3532 = vmatprep.mubr.f32.mxu1 %v4627_v15  ;;  %v3710_v3 = vsel %vm3705_vm8, %v5271_v8, %v5382_v57  ;;  %v3750_v4 = vrot.slane %v5394_v46, %v4977_v59  ;;  %v3762_v11 = vmul.f32 %v3734_v48, %v3709_v23 }
 0x242   : > { %3469 = vmatpush1.msra.mxu1 %v3386_v58  ;;  %v3329_v30 = vpop.permute.xlu1 %3328  ;;  %3539 = vmatprep.subr.mxu0 %v3389_v1  ;;  %v3761_v51 = vmul.f32 %v3730_v61, %v3710_v3 }
 0x243   : > { %v3331_v16 = vsel %vm3330_vm7, %v5317_v32, %v3329_v30  ;;  %v3338_v0 = vsel %vm3330_vm7, %v3329_v30, %v5294_v40  ;;  %3540 = vmatpush1.msra.mxu0 %v3388_v27  ;;  %3603 = vmatprep.mubr.f32.mxu0 %v4627_v15  ;;  %v3702_v32 = vpop.permute.xlu0 %3701 }
 0x244   : > { %v3390_v55 = vmul.f32 %v3371_v7, %v3331_v16  ;;  %v3391_v5 = vmul.f32 %v3375_v37, %v3338_v0  ;;  %4212 = vmatmul.mubr.msk.f32.vlgmr.msra.gmra.mrb[4].mxu1 %vm942_vm1, %v4210_v53  ;;  %4213 = vmatmul.mubr.msk.f32.vlgmr.msra.gmra.mrb[6].mxu0 %vm942_vm1, %v4210_v53 }
 0x245   : > { %3772 = vmatprep.subr.mxu0 %v3760_v45  ;;  %3674 = vmatprep.mubr.f32.mxu1 %v4627_v15 }
 0x246   : > { %3773 = vmatpush1.msra.mxu0 %v3759_v19  ;;  %v3700_v40 = vpop.permute.xlu1 %3699  ;;  %3610 = vmatprep.subr.mxu1 %v3391_v5 }
 0x247   : > { %v3707_v8 = vsel %vm3705_vm8, %v3700_v40, %v3702_v32  ;;  %v3708_v31 = vsel %vm3705_vm8, %v5289_v25, %v3700_v40  ;;  %3611 = vmatpush1.msra.mxu1 %v3390_v55  ;;  %3836 = vmatprep.mubr.f32.mxu0 %v4627_v15 }
 0x248   : > { %v3763_v54 = vmul.f32 %v3738_v39, %v3708_v31  ;;  %v3764_v9 = vmul.f32 %v3742_v38, %v3707_v8  ;;  %4214 = vmatmul.mubr.msk.f32.vlgmr.msra.gmra.mrb[6].mxu1 %vm942_vm1, %v4210_v53  ;;  %4218 = vmatmul.mubr.msk.f32.vlgmr.msra.gmra.mrb[4].mxu0 %vm942_vm1, %v4217_v6 }
 0x249   : > { %3843 = vmatprep.subr.mxu1 %v3762_v11  ;;  %3907 = vmatprep.mubr.f32.mxu1 %v4627_v15 }
 0x24a   : > { %3844 = vmatpush1.msra.mxu1 %v3761_v51  ;;  %v3704_v59 = vpop.permute.xlu1 %3703  ;;  %3914 = vmatprep.subr.mxu0 %v3764_v9 }
 0x24b   : > { %v3706_v12 = vsel %vm3705_vm8, %v3702_v32, %v3704_v59  ;;  %v3713_v25 = vsel %vm3705_vm8, %v3704_v59, %v5424_v47  ;;  %3915 = vmatpush1.msra.mxu0 %v3763_v54  ;;  %3978 = vmatprep.mubr.f32.mxu0 %v4627_v15 }
 0x24c   : > { %v3765_v50 = vmul.f32 %v3746_v14, %v3706_v12  ;;  %v3766_v24 = vmul.f32 %v3750_v4, %v3713_v25  ;;  %4219 = vmatmul.mubr.msk.f32.vlgmr.msra.gmra.mrb[4].mxu1 %vm942_vm1, %v4217_v6  ;;  %4220 = vmatmul.mubr.msk.f32.vlgmr.msra.gmra.mrb[6].mxu0 %vm942_vm1, %v4217_v6 }
 0x24d   : > { %4049 = vmatprep.mubr.f32.mxu1 %v4627_v15 }
 0x24e   : > { %3985 = vmatprep.subr.mxu1 %v3766_v24 }
 0x24f   : > { %3986 = vmatpush1.msra.mxu1 %v3765_v50 }
 0x250   : > { %4221 = vmatmul.mubr.msk.f32.vlgmr.msra.gmra.mrb[6].mxu1 %vm942_vm1, %v4217_v6  ;;  %v4068_v22 = vpop.permute.xlu0 %4067 }
 0x31b   : > { %v3838_v41 = vpop.f32.mrb[4].mxu0 }
 0x31c   : > { %v4070_v34 = vadd.f32 %v4068_v22, %v3838_v41  ;;  %v3840_v57 = vpop.f32.mrb[5].mxu0 }
 0x31d   : > { %v4071_v42 = vadd.f32 %v4068_v22, %v3840_v57 }
 0x31e   : > { %4078 = vst [vmem:[%s239_s9] sm:$0xff] %v4070_v34 }
 0x31f   : > { %v3909_v29 = vpop.f32.mrb[4].mxu1  ;;  %4079 = vst [vmem:[%s239_s9 + $0x8] sm:$0xff] %v4071_v42  ;;  %v3980_v46 = vpop.f32.mrb[6].mxu0 }
 0x320   : > { %v4072_v18 = vadd.f32 %v4068_v22, %v3909_v29  ;;  %v3911_v15 = vpop.f32.mrb[5].mxu1  ;;  %v4074_v52 = vadd.f32 %v4068_v22, %v3980_v46  ;;  %v3982_v36 = vpop.f32.mrb[7].mxu0 }
 0x321   : > { %v4073_v62 = vadd.f32 %v4068_v22, %v3911_v15  ;;  %v4075_v49 = vadd.f32 %v4068_v22, %v3982_v36 }
 0x322   : > { %4080 = vst [vmem:[%s239_s9 + $0x10] sm:$0xff] %v4072_v18  ;;  %4082 = vst [vmem:[%s239_s9 + $0x20] sm:$0xff] %v4074_v52 }
 0x323   : > { %4081 = vst [vmem:[%s239_s9 + $0x18] sm:$0xff] %v4073_v62  ;;  %v4051_v21 = vpop.f32.mrb[6].mxu1  ;;  %4083 = vst [vmem:[%s239_s9 + $0x28] sm:$0xff] %v4075_v49 }
 0x324   : > { %v4076_v33 = vadd.f32 %v4068_v22, %v4051_v21  ;;  %v4053_v35 = vpop.f32.mrb[7].mxu1 }
 0x325   : > { %v4077_v13 = vadd.f32 %v4068_v22, %v4053_v35 }
 0x326   : > { %4084 = vst [vmem:[%s239_s9 + $0x30] sm:$0xff] %v4076_v33 }
 0x327   : > { %4085 = vst [vmem:[%s239_s9 + $0x38] sm:$0xff] %v4077_v13 }
 0x328 PF: > { %s16_s18 = sadd.s32 1, %s4616_s18  }
 0x329   : > { %p13_p3 = scmp.ge.s32.totalorder %s16_s18, 4  }
 0x32b   :  { %15 = sbr.rel (!%p13_p3) target bundleno = 1 (0x1), region = 90 }
 0x332   :  { %4107 = vsyncpa [#allocation3], 1 }
 0x333   :  { %4109 = vsyncpa [#allocation3 + $0x1], 1 }

</bundles_post_ra>
